<compile_context>
chip_gen: v5e
topology: v5e:2x2
jax: 0.10.0
libtpu: 0.0.40
codegen_flags: <defaults>
</compile_context>

<pallas_src>
import functools

import jax
import jax.numpy as jnp
from jax import lax
from jax.experimental import pallas as pl
from jax.experimental.pallas import tpu as pltpu

IMAGE_COLOR = 3
NDF = 8                               # feature_maps_size_discriminator
BN_EPS = 1e-5
MXU_DTYPE = jnp.bfloat16              # bf16-native MXU on v5e / v6e / v7x
_VMEM_BUDGET_BYTES = 8 * 1024 * 1024  # single-fused-block threshold per layer
_VMEM_LIMIT_BYTES = 32 * 1024 * 1024  # scoped VMEM for the tiled paths


def _activate(x, act):
    if act == "leaky":
        return jnp.where(x >= 0.0, x, 0.2 * x)        # LeakyReLU(0.2)
    if act == "sigmoid":
        return 1.0 / (1.0 + jnp.exp(-x))
    return x


# ---------------------------------------------------------------------------
# Pallas kernels.  All GEMMs are  W(Cout, K) @ P(K, M) -> (Cout, M)  so the
# large M = N*Ho*Wo axis sits on the lanes (lane-dense compute and stores).
# ---------------------------------------------------------------------------
def _conv_act_kernel(w_ref, p_ref, o_ref, *, act):
    acc = jnp.dot(w_ref[...], p_ref[...], preferred_element_type=jnp.float32)
    o_ref[...] = _activate(acc, act).astype(o_ref.dtype)


def _conv_bn_act_kernel(w_ref, p_ref, gamma_ref, beta_ref, o_ref, *, act):
    acc = jnp.dot(w_ref[...], p_ref[...], preferred_element_type=jnp.float32)
    inv_m = 1.0 / acc.shape[1]
    mean = jnp.sum(acc, axis=1, keepdims=True) * inv_m       # lane reduce
    ex2 = jnp.sum(acc * acc, axis=1, keepdims=True) * inv_m  # single-pass var
    var = ex2 - mean * mean
    acc = (acc - mean) * lax.rsqrt(var + BN_EPS)
    acc = acc * gamma_ref[...] + beta_ref[...]
    o_ref[...] = _activate(acc, act).astype(o_ref.dtype)


def _conv_stats_kernel(w_ref, p_ref, y_ref, sum_ref, ssq_ref):
    # Tiled over M ("arbitrary" axis): write the conv tile and accumulate the
    # per-channel sum / sum-of-squares across all tiles (exact batch stats).
    acc = jnp.dot(w_ref[...], p_ref[...], preferred_element_type=jnp.float32)
    y_ref[...] = acc

    @pl.when(pl.program_id(0) == 0)
    def _():
        sum_ref[...] = jnp.zeros_like(sum_ref)
        ssq_ref[...] = jnp.zeros_like(ssq_ref)

    sum_ref[...] += jnp.sum(acc, axis=1, keepdims=True)
    ssq_ref[...] += jnp.sum(acc * acc, axis=1, keepdims=True)


def _scale_shift_act_kernel(y_ref, scale_ref, shift_ref, o_ref, *, act):
    y = y_ref[...] * scale_ref[...] + shift_ref[...]
    o_ref[...] = _activate(y, act).astype(o_ref.dtype)


# ---------------------------------------------------------------------------
# pallas_call wrappers
# ---------------------------------------------------------------------------
def _vmem_spec():
    return pl.BlockSpec(memory_space=pltpu.MemorySpace.VMEM)


def _single_block_call(kernel, inputs, out_shape):
    return pl.pallas_call(
        kernel,
        out_shape=out_shape,
        in_specs=[_vmem_spec() for _ in inputs],
        out_specs=_vmem_spec(),
    )(*inputs)


def _conv_act_tiled(w_mat, patches, cout, act, tm):
    k, m = patches.shape
    return pl.pallas_call(
        functools.partial(_conv_act_kernel, act=act),
        out_shape=jax.ShapeDtypeStruct((cout, m), jnp.float32),
        grid_spec=pltpu.PrefetchScalarGridSpec(
            num_scalar_prefetch=0,
            grid=(m // tm,),
            in_specs=[pl.BlockSpec((cout, k), lambda i: (0, 0)),
                      pl.BlockSpec((k, tm), lambda i: (0, i))],
            out_specs=pl.BlockSpec((cout, tm), lambda i: (0, i))),
        compiler_params=pltpu.CompilerParams(
            dimension_semantics=("parallel",),
            vmem_limit_bytes=_VMEM_LIMIT_BYTES),
    )(w_mat, patches)


def _conv_bn_act_tiled(w_mat, patches, gamma, beta, cout, act, tm):
    k, m = patches.shape
    grid = (m // tm,)
    # Pass 1: GEMM tiles + exact cross-tile batch statistics (accumulated into
    # resident output blocks across the "arbitrary" M axis).
    y, psum, pssq = pl.pallas_call(
        _conv_stats_kernel,
        out_shape=(jax.ShapeDtypeStruct((cout, m), jnp.float32),
                   jax.ShapeDtypeStruct((cout, 1), jnp.float32),
                   jax.ShapeDtypeStruct((cout, 1), jnp.float32)),
        grid_spec=pltpu.PrefetchScalarGridSpec(
            num_scalar_prefetch=0,
            grid=grid,
            in_specs=[pl.BlockSpec((cout, k), lambda i: (0, 0)),
                      pl.BlockSpec((k, tm), lambda i: (0, i))],
            out_specs=(pl.BlockSpec((cout, tm), lambda i: (0, i)),
                       pl.BlockSpec((cout, 1), lambda i: (0, 0)),
                       pl.BlockSpec((cout, 1), lambda i: (0, 0)))),
        compiler_params=pltpu.CompilerParams(
            dimension_semantics=("arbitrary",),
            vmem_limit_bytes=_VMEM_LIMIT_BYTES),
    )(w_mat, patches)
    mean = psum / m
    var = pssq / m - mean * mean
    scale = gamma * lax.rsqrt(var + BN_EPS)
    shift = beta - mean * scale
    # Pass 2: normalize + activation, fully parallel over M tiles.
    return pl.pallas_call(
        functools.partial(_scale_shift_act_kernel, act=act),
        out_shape=jax.ShapeDtypeStruct((cout, m), jnp.float32),
        grid_spec=pltpu.PrefetchScalarGridSpec(
            num_scalar_prefetch=0,
            grid=grid,
            in_specs=[pl.BlockSpec((cout, tm), lambda i: (0, i)),
                      pl.BlockSpec((cout, 1), lambda i: (0, 0)),
                      pl.BlockSpec((cout, 1), lambda i: (0, 0))],
            out_specs=pl.BlockSpec((cout, tm), lambda i: (0, i))),
        compiler_params=pltpu.CompilerParams(
            dimension_semantics=("parallel",),
            vmem_limit_bytes=_VMEM_LIMIT_BYTES),
    )(y, scale, shift)


# ---------------------------------------------------------------------------
# Glue: im2col from the (C, N, H, W) inter-layer layout (plain JAX).
# ---------------------------------------------------------------------------
def _im2col_cnhw(x, kh, kw, stride, pad):
    """x: (C, N, H, W) f32 -> bf16 patches (C*kh*kw, N*Ho*Wo).

    Tap flattening order is (C, kh, kw), matching the pre-reshaped conv weight
    (Cout, Cin*kh*kw).  The GEMM output (Cout, N*Ho*Wo) then reshapes straight
    into the next layer's (C, N, H, W) layout — no transposes between layers.
    """
    x = jnp.pad(x, ((0, 0), (0, 0), (pad, pad), (pad, pad)))
    c, n, h, w = x.shape
    ho = (h - kh) // stride + 1
    wo = (w - kw) // stride + 1
    taps = []
    for i in range(kh):
        for j in range(kw):
            taps.append(x[:, :, i:i + stride * ho:stride, j:j + stride * wo:stride])
    p = jnp.stack(taps, axis=1)                        # (C, kh*kw, N, Ho, Wo)
    p = p.reshape(c * kh * kw, n * ho * wo)
    return p.astype(MXU_DTYPE), (n, ho, wo)            # bf16 cast after zero-pad


def _pick_m_tile(m):
    for t in (512, 256, 128):
        if m % t == 0 and m // t >= 2:
            return t
    return None


def discriminator_forward(x, params, *, vmem_budget_bytes=_VMEM_BUDGET_BYTES):
    """x: (N, image_color, 64, 64) NCHW f32 -> (N, 1, 1, 1) f32."""
    h = jnp.transpose(x, (1, 0, 2, 3))                 # NCHW -> CNHW, once
    for (w_mat, gamma, beta, kh, kw, stride, pad, use_bn, act) in params:
        cout = w_mat.shape[0]
        patches, (n, ho, wo) = _im2col_cnhw(h, kh, kw, stride, pad)
        _, m = patches.shape
        tm = _pick_m_tile(m)
        layer_bytes = (patches.size * patches.dtype.itemsize
                       + w_mat.size * w_mat.dtype.itemsize
                       + cout * m * 4)
        if tm is None or layer_bytes <= vmem_budget_bytes:
            # Whole layer fits comfortably in VMEM: one fused kernel launch.
            if use_bn:
                out = _single_block_call(
                    functools.partial(_conv_bn_act_kernel, act=act),
                    (w_mat, patches, gamma, beta),
                    jax.ShapeDtypeStruct((cout, m), jnp.float32))
            else:
                out = _single_block_call(
                    functools.partial(_conv_act_kernel, act=act),
                    (w_mat, patches),
                    jax.ShapeDtypeStruct((cout, m), jnp.float32))
        else:
            # Large working set: tile over M (pipelined, megacore-parallel
            # where legal; exact two-pass batch stats for BN layers).
            if use_bn:
                out = _conv_bn_act_tiled(w_mat, patches, gamma, beta, cout, act, tm)
            else:
                out = _conv_act_tiled(w_mat, patches, cout, act, tm)
        h = out.reshape(cout, n, ho, wo)               # already CNHW for next layer
    return jnp.transpose(h, (1, 0, 2, 3))              # (1, N, 1, 1) -> (N, 1, 1, 1)


# ---------------------------------------------------------------------------
# Deterministic parameter init (DCGAN-style: conv ~ N(0, .02), gamma ~ N(1, .02))
# ---------------------------------------------------------------------------
def init_params(key):
    layer_defs = [
        # (cin, cout, stride, pad, use_bn, act)
        (IMAGE_COLOR, NDF, 2, 1, False, "leaky"),
        (NDF, NDF * 2, 2, 1, True, "leaky"),
        (NDF * 2, NDF * 4, 2, 1, True, "leaky"),
        (NDF * 4, NDF * 8, 2, 1, True, "leaky"),
        (NDF * 8, 1, 1, 0, False, "sigmoid"),
    ]
    kernel_params, ref_params = [], []
    for (cin, cout, stride, pad, use_bn, act) in layer_defs:
        key, kw_, kg_ = jax.random.split(key, 3)
        w = 0.02 * jax.random.normal(kw_, (cout, cin, 4, 4), jnp.float32)
        gamma = 1.0 + 0.02 * jax.random.normal(kg_, (cout,), jnp.float32)
        beta = jnp.zeros((cout,), jnp.float32)
        # Pre-reshape / pre-cast the GEMM weight once at init (feedback item).
        w_mat = w.reshape(cout, cin * 16).astype(MXU_DTYPE)
        kernel_params.append((w_mat, gamma.reshape(cout, 1), beta.reshape(cout, 1),
                              4, 4, stride, pad, use_bn, act))
        ref_params.append((w, gamma, beta, stride, pad, use_bn, act))
    return kernel_params, ref_params


# ---------------------------------------------------------------------------
# Pure-JAX reference (same bf16 input quantization as the kernels, f32 math).
# ---------------------------------------------------------------------------
def reference_forward(x, ref_params):
    h = x
    for (w, gamma, beta, stride, pad, use_bn, act) in ref_params:
        h_q = h.astype(MXU_DTYPE).astype(jnp.float32)
        w_q = w.astype(MXU_DTYPE).astype(jnp.float32)
        h = lax.conv_general_dilated(
            h_q, w_q, window_strides=(stride, stride),
            padding=[(pad, pad), (pad, pad)],
            dimension_numbers=("NCHW", "OIHW", "NCHW"))
        if use_bn:
            mean = jnp.mean(h, axis=(0, 2, 3), keepdims=True)
            var = jnp.mean((h - mean) ** 2, axis=(0, 2, 3), keepdims=True)
            h = (h - mean) * lax.rsqrt(var + BN_EPS)
            h = h * gamma[None, :, None, None] + beta[None, :, None, None]
        if act == "leaky":
            h = jnp.where(h >= 0.0, h, 0.2 * h)
        else:
            h = jax.nn.sigmoid(h)
    return h


if __name__ == "__main__":
    key = jax.random.PRNGKey(0)
    key, kx = jax.random.split(key)
    # Smallest shape consistent with the module: the final 4x4 / stride-1 /
    # pad-0 conv requires a 64x64 input to reduce to 1x1.
    x = jax.random.normal(kx, (2, IMAGE_COLOR, 64, 64), jnp.float32)  # NCHW
    params, ref_params = init_params(key)

    ref = jax.block_until_ready(reference_forward(x, ref_params))

    # Default path: every layer is one fused (GEMM -> BN -> act) kernel launch.
    fwd = jax.jit(lambda xx: discriminator_forward(xx, params))
    out = jax.block_until_ready(fwd(x))
    assert out.shape == (2, 1, 1, 1), out.shape
    assert jnp.allclose(out, ref, atol=2e-3, rtol=2e-3), float(
        jnp.max(jnp.abs(out - ref)))

    # Forced-tiled path: exercises the pipelined M-grid GEMM and the two-pass
    # (exact cross-tile batch stats) BatchNorm kernels used at large batch.
    fwd_tiled = jax.jit(
        lambda xx: discriminator_forward(xx, params, vmem_budget_bytes=1))
    out_tiled = jax.block_until_ready(fwd_tiled(x))
    assert out_tiled.shape == (2, 1, 1, 1), out_tiled.shape
    assert jnp.allclose(out_tiled, ref, atol=2e-3, rtol=2e-3), float(
        jnp.max(jnp.abs(out_tiled - ref)))

    print("KERNEL_OK")
</pallas_src>

<mosaic_0001>
module attributes {stable_mosaic.version = 11 : i64} {
  func.func @_conv_act_kernel(%arg0: memref<8x48xbf16, #tpu.memory_space<vmem>>, %arg1: memref<48x2048xbf16, #tpu.memory_space<vmem>>, %arg2: memref<8x2048xf32, #tpu.memory_space<vmem>>) attributes {dimension_semantics = [], scalar_prefetch = 0 : i64, scratch_operands = 0 : i64, tpu.core_type = #tpu.core_type<tc>} {
    %c0 = arith.constant 0 : index
    %c0_0 = arith.constant 0 : index
    %0 = vector.load %arg0[%c0, %c0_0] : memref<8x48xbf16, #tpu.memory_space<vmem>>, vector<8x48xbf16>
    %c0_1 = arith.constant 0 : index
    %c0_2 = arith.constant 0 : index
    %1 = vector.load %arg1[%c0_1, %c0_2] : memref<48x2048xbf16, #tpu.memory_space<vmem>>, vector<48x2048xbf16>
    %cst = arith.constant dense<0.000000e+00> : vector<8x2048xf32>
    %2 = tpu.matmul %0, %1, %cst {dimension_numbers = #tpu.dot_dimension_numbers<[1], [0], [0], [1], [0, 0, 1, 1], [], []>} : vector<8x48xbf16>, vector<48x2048xbf16>, vector<8x2048xf32> -> vector<8x2048xf32>
    %cst_3 = arith.constant 0.000000e+00 : f32
    %3 = vector.broadcast %cst_3 : f32 to vector<8x2048xf32>
    %4 = arith.cmpf oge, %2, %3 : vector<8x2048xf32>
    %cst_4 = arith.constant 2.000000e-01 : f32
    %5 = vector.broadcast %cst_4 : f32 to vector<8x2048xf32>
    %6 = arith.mulf %5, %2 : vector<8x2048xf32>
    %7 = arith.select %4, %2, %6 : vector<8x2048xi1>, vector<8x2048xf32>
    %c0_5 = arith.constant 0 : index
    %c0_6 = arith.constant 0 : index
    %8 = vector.load %arg2[%c0_5, %c0_6] : memref<8x2048xf32, #tpu.memory_space<vmem>>, vector<8x2048xf32>
    tpu.vector_store %arg2[%c0_5, %c0_6], %7 {strides = array<i32>} : memref<8x2048xf32, #tpu.memory_space<vmem>>, vector<8x2048xf32>,
    return
  }
}

module attributes {stable_mosaic.version = 11 : i64} {
  func.func @_conv_bn_act_kernel(%arg0: memref<16x128xbf16, #tpu.memory_space<vmem>>, %arg1: memref<128x512xbf16, #tpu.memory_space<vmem>>, %arg2: memref<16x1xf32, #tpu.memory_space<vmem>>, %arg3: memref<16x1xf32, #tpu.memory_space<vmem>>, %arg4: memref<16x512xf32, #tpu.memory_space<vmem>>) attributes {dimension_semantics = [], scalar_prefetch = 0 : i64, scratch_operands = 0 : i64, tpu.core_type = #tpu.core_type<tc>} {
    %c0 = arith.constant 0 : index
    %c0_0 = arith.constant 0 : index
    %0 = vector.load %arg0[%c0, %c0_0] : memref<16x128xbf16, #tpu.memory_space<vmem>>, vector<16x128xbf16>
    %c0_1 = arith.constant 0 : index
    %c0_2 = arith.constant 0 : index
    %1 = vector.load %arg1[%c0_1, %c0_2] : memref<128x512xbf16, #tpu.memory_space<vmem>>, vector<128x512xbf16>
    %cst = arith.constant dense<0.000000e+00> : vector<16x512xf32>
    %2 = tpu.matmul %0, %1, %cst {dimension_numbers = #tpu.dot_dimension_numbers<[1], [0], [0], [1], [0, 0, 1, 1], [], []>} : vector<16x128xbf16>, vector<128x512xbf16>, vector<16x512xf32> -> vector<16x512xf32>
    %cst_3 = arith.constant dense<0.000000e+00> : vector<16xf32>
    %3 = vector.multi_reduction <add>, %2, %cst_3 [1] : vector<16x512xf32> to vector<16xf32>
    %4 = vector.shape_cast %3 : vector<16xf32> to vector<16x1xf32>
    %cst_4 = arith.constant 0.001953125 : f32
    %5 = vector.broadcast %cst_4 : f32 to vector<16x1xf32>
    %6 = arith.mulf %4, %5 : vector<16x1xf32>
    %7 = arith.mulf %2, %2 : vector<16x512xf32>
    %cst_5 = arith.constant dense<0.000000e+00> : vector<16xf32>
    %8 = vector.multi_reduction <add>, %7, %cst_5 [1] : vector<16x512xf32> to vector<16xf32>
    %9 = vector.shape_cast %8 : vector<16xf32> to vector<16x1xf32>
    %cst_6 = arith.constant 0.001953125 : f32
    %10 = vector.broadcast %cst_6 : f32 to vector<16x1xf32>
    %11 = arith.mulf %9, %10 : vector<16x1xf32>
    %12 = arith.mulf %6, %6 : vector<16x1xf32>
    %13 = arith.subf %11, %12 : vector<16x1xf32>
    %14 = vector.broadcast %6 : vector<16x1xf32> to vector<16x512xf32>
    %15 = arith.subf %2, %14 : vector<16x512xf32>
    %cst_7 = arith.constant 9.99999974E-6 : f32
    %16 = vector.broadcast %cst_7 : f32 to vector<16x1xf32>
    %17 = arith.addf %13, %16 : vector<16x1xf32>
    %18 = math.rsqrt %17 : vector<16x1xf32>
    %19 = vector.broadcast %18 : vector<16x1xf32> to vector<16x512xf32>
    %20 = arith.mulf %15, %19 : vector<16x512xf32>
    %c0_8 = arith.constant 0 : index
    %c0_9 = arith.constant 0 : index
    %21 = vector.load %arg2[%c0_8, %c0_9] : memref<16x1xf32, #tpu.memory_space<vmem>>, vector<16x1xf32>
    %22 = vector.broadcast %21 : vector<16x1xf32> to vector<16x512xf32>
    %23 = arith.mulf %20, %22 : vector<16x512xf32>
    %c0_10 = arith.constant 0 : index
    %c0_11 = arith.constant 0 : index
    %24 = vector.load %arg3[%c0_10, %c0_11] : memref<16x1xf32, #tpu.memory_space<vmem>>, vector<16x1xf32>
    %25 = vector.broadcast %24 : vector<16x1xf32> to vector<16x512xf32>
    %26 = arith.addf %23, %25 : vector<16x512xf32>
    %cst_12 = arith.constant 0.000000e+00 : f32
    %27 = vector.broadcast %cst_12 : f32 to vector<16x512xf32>
    %28 = arith.cmpf oge, %26, %27 : vector<16x512xf32>
    %cst_13 = arith.constant 2.000000e-01 : f32
    %29 = vector.broadcast %cst_13 : f32 to vector<16x512xf32>
    %30 = arith.mulf %29, %26 : vector<16x512xf32>
    %31 = arith.select %28, %26, %30 : vector<16x512xi1>, vector<16x512xf32>
    %c0_14 = arith.constant 0 : index
    %c0_15 = arith.constant 0 : index
    %32 = vector.load %arg4[%c0_14, %c0_15] : memref<16x512xf32, #tpu.memory_space<vmem>>, vector<16x512xf32>
    tpu.vector_store %arg4[%c0_14, %c0_15], %31 {strides = array<i32>} : memref<16x512xf32, #tpu.memory_space<vmem>>, vector<16x512xf32>,
    return
  }
}

module attributes {stable_mosaic.version = 11 : i64} {
  func.func @_conv_bn_act_kernel(%arg0: memref<32x256xbf16, #tpu.memory_space<vmem>>, %arg1: memref<256x128xbf16, #tpu.memory_space<vmem>>, %arg2: memref<32x1xf32, #tpu.memory_space<vmem>>, %arg3: memref<32x1xf32, #tpu.memory_space<vmem>>, %arg4: memref<32x128xf32, #tpu.memory_space<vmem>>) attributes {dimension_semantics = [], scalar_prefetch = 0 : i64, scratch_operands = 0 : i64, tpu.core_type = #tpu.core_type<tc>} {
    %c0 = arith.constant 0 : index
    %c0_0 = arith.constant 0 : index
    %0 = vector.load %arg0[%c0, %c0_0] : memref<32x256xbf16, #tpu.memory_space<vmem>>, vector<32x256xbf16>
    %c0_1 = arith.constant 0 : index
    %c0_2 = arith.constant 0 : index
    %1 = vector.load %arg1[%c0_1, %c0_2] : memref<256x128xbf16, #tpu.memory_space<vmem>>, vector<256x128xbf16>
    %cst = arith.constant dense<0.000000e+00> : vector<32x128xf32>
    %2 = tpu.matmul %0, %1, %cst {dimension_numbers = #tpu.dot_dimension_numbers<[1], [0], [0], [1], [0, 0, 1, 1], [], []>} : vector<32x256xbf16>, vector<256x128xbf16>, vector<32x128xf32> -> vector<32x128xf32>
    %cst_3 = arith.constant dense<0.000000e+00> : vector<32xf32>
    %3 = vector.multi_reduction <add>, %2, %cst_3 [1] : vector<32x128xf32> to vector<32xf32>
    %4 = vector.shape_cast %3 : vector<32xf32> to vector<32x1xf32>
    %cst_4 = arith.constant 7.812500e-03 : f32
    %5 = vector.broadcast %cst_4 : f32 to vector<32x1xf32>
    %6 = arith.mulf %4, %5 : vector<32x1xf32>
    %7 = arith.mulf %2, %2 : vector<32x128xf32>
    %cst_5 = arith.constant dense<0.000000e+00> : vector<32xf32>
    %8 = vector.multi_reduction <add>, %7, %cst_5 [1] : vector<32x128xf32> to vector<32xf32>
    %9 = vector.shape_cast %8 : vector<32xf32> to vector<32x1xf32>
    %cst_6 = arith.constant 7.812500e-03 : f32
    %10 = vector.broadcast %cst_6 : f32 to vector<32x1xf32>
    %11 = arith.mulf %9, %10 : vector<32x1xf32>
    %12 = arith.mulf %6, %6 : vector<32x1xf32>
    %13 = arith.subf %11, %12 : vector<32x1xf32>
    %14 = vector.broadcast %6 : vector<32x1xf32> to vector<32x128xf32>
    %15 = arith.subf %2, %14 : vector<32x128xf32>
    %cst_7 = arith.constant 9.99999974E-6 : f32
    %16 = vector.broadcast %cst_7 : f32 to vector<32x1xf32>
    %17 = arith.addf %13, %16 : vector<32x1xf32>
    %18 = math.rsqrt %17 : vector<32x1xf32>
    %19 = vector.broadcast %18 : vector<32x1xf32> to vector<32x128xf32>
    %20 = arith.mulf %15, %19 : vector<32x128xf32>
    %c0_8 = arith.constant 0 : index
    %c0_9 = arith.constant 0 : index
    %21 = vector.load %arg2[%c0_8, %c0_9] : memref<32x1xf32, #tpu.memory_space<vmem>>, vector<32x1xf32>
    %22 = vector.broadcast %21 : vector<32x1xf32> to vector<32x128xf32>
    %23 = arith.mulf %20, %22 : vector<32x128xf32>
    %c0_10 = arith.constant 0 : index
    %c0_11 = arith.constant 0 : index
    %24 = vector.load %arg3[%c0_10, %c0_11] : memref<32x1xf32, #tpu.memory_space<vmem>>, vector<32x1xf32>
    %25 = vector.broadcast %24 : vector<32x1xf32> to vector<32x128xf32>
    %26 = arith.addf %23, %25 : vector<32x128xf32>
    %cst_12 = arith.constant 0.000000e+00 : f32
    %27 = vector.broadcast %cst_12 : f32 to vector<32x128xf32>
    %28 = arith.cmpf oge, %26, %27 : vector<32x128xf32>
    %cst_13 = arith.constant 2.000000e-01 : f32
    %29 = vector.broadcast %cst_13 : f32 to vector<32x128xf32>
    %30 = arith.mulf %29, %26 : vector<32x128xf32>
    %31 = arith.select %28, %26, %30 : vector<32x128xi1>, vector<32x128xf32>
    %c0_14 = arith.constant 0 : index
    %c0_15 = arith.constant 0 : index
    %32 = vector.load %arg4[%c0_14, %c0_15] : memref<32x128xf32, #tpu.memory_space<vmem>>, vector<32x128xf32>
    tpu.vector_store %arg4[%c0_14, %c0_15], %31 {strides = array<i32>} : memref<32x128xf32, #tpu.memory_space<vmem>>, vector<32x128xf32>,
    return
  }
}

module attributes {stable_mosaic.version = 11 : i64} {
  func.func @_conv_bn_act_kernel(%arg0: memref<64x512xbf16, #tpu.memory_space<vmem>>, %arg1: memref<512x32xbf16, #tpu.memory_space<vmem>>, %arg2: memref<64x1xf32, #tpu.memory_space<vmem>>, %arg3: memref<64x1xf32, #tpu.memory_space<vmem>>, %arg4: memref<64x32xf32, #tpu.memory_space<vmem>>) attributes {dimension_semantics = [], scalar_prefetch = 0 : i64, scratch_operands = 0 : i64, tpu.core_type = #tpu.core_type<tc>} {
    %c0 = arith.constant 0 : index
    %c0_0 = arith.constant 0 : index
    %0 = vector.load %arg0[%c0, %c0_0] : memref<64x512xbf16, #tpu.memory_space<vmem>>, vector<64x512xbf16>
    %c0_1 = arith.constant 0 : index
    %c0_2 = arith.constant 0 : index
    %1 = vector.load %arg1[%c0_1, %c0_2] : memref<512x32xbf16, #tpu.memory_space<vmem>>, vector<512x32xbf16>
    %cst = arith.constant dense<0.000000e+00> : vector<64x32xf32>
    %2 = tpu.matmul %0, %1, %cst {dimension_numbers = #tpu.dot_dimension_numbers<[1], [0], [0], [1], [0, 0, 1, 1], [], []>} : vector<64x512xbf16>, vector<512x32xbf16>, vector<64x32xf32> -> vector<64x32xf32>
    %cst_3 = arith.constant dense<0.000000e+00> : vector<64xf32>
    %3 = vector.multi_reduction <add>, %2, %cst_3 [1] : vector<64x32xf32> to vector<64xf32>
    %4 = vector.shape_cast %3 : vector<64xf32> to vector<64x1xf32>
    %cst_4 = arith.constant 3.125000e-02 : f32
    %5 = vector.broadcast %cst_4 : f32 to vector<64x1xf32>
    %6 = arith.mulf %4, %5 : vector<64x1xf32>
    %7 = arith.mulf %2, %2 : vector<64x32xf32>
    %cst_5 = arith.constant dense<0.000000e+00> : vector<64xf32>
    %8 = vector.multi_reduction <add>, %7, %cst_5 [1] : vector<64x32xf32> to vector<64xf32>
    %9 = vector.shape_cast %8 : vector<64xf32> to vector<64x1xf32>
    %cst_6 = arith.constant 3.125000e-02 : f32
    %10 = vector.broadcast %cst_6 : f32 to vector<64x1xf32>
    %11 = arith.mulf %9, %10 : vector<64x1xf32>
    %12 = arith.mulf %6, %6 : vector<64x1xf32>
    %13 = arith.subf %11, %12 : vector<64x1xf32>
    %14 = vector.broadcast %6 : vector<64x1xf32> to vector<64x32xf32>
    %15 = arith.subf %2, %14 : vector<64x32xf32>
    %cst_7 = arith.constant 9.99999974E-6 : f32
    %16 = vector.broadcast %cst_7 : f32 to vector<64x1xf32>
    %17 = arith.addf %13, %16 : vector<64x1xf32>
    %18 = math.rsqrt %17 : vector<64x1xf32>
    %19 = vector.broadcast %18 : vector<64x1xf32> to vector<64x32xf32>
    %20 = arith.mulf %15, %19 : vector<64x32xf32>
    %c0_8 = arith.constant 0 : index
    %c0_9 = arith.constant 0 : index
    %21 = vector.load %arg2[%c0_8, %c0_9] : memref<64x1xf32, #tpu.memory_space<vmem>>, vector<64x1xf32>
    %22 = vector.broadcast %21 : vector<64x1xf32> to vector<64x32xf32>
    %23 = arith.mulf %20, %22 : vector<64x32xf32>
    %c0_10 = arith.constant 0 : index
    %c0_11 = arith.constant 0 : index
    %24 = vector.load %arg3[%c0_10, %c0_11] : memref<64x1xf32, #tpu.memory_space<vmem>>, vector<64x1xf32>
    %25 = vector.broadcast %24 : vector<64x1xf32> to vector<64x32xf32>
    %26 = arith.addf %23, %25 : vector<64x32xf32>
    %cst_12 = arith.constant 0.000000e+00 : f32
    %27 = vector.broadcast %cst_12 : f32 to vector<64x32xf32>
    %28 = arith.cmpf oge, %26, %27 : vector<64x32xf32>
    %cst_13 = arith.constant 2.000000e-01 : f32
    %29 = vector.broadcast %cst_13 : f32 to vector<64x32xf32>
    %30 = arith.mulf %29, %26 : vector<64x32xf32>
    %31 = arith.select %28, %26, %30 : vector<64x32xi1>, vector<64x32xf32>
    %c0_14 = arith.constant 0 : index
    %c0_15 = arith.constant 0 : index
    %32 = vector.load %arg4[%c0_14, %c0_15] : memref<64x32xf32, #tpu.memory_space<vmem>>, vector<64x32xf32>
    tpu.vector_store %arg4[%c0_14, %c0_15], %31 {strides = array<i32>} : memref<64x32xf32, #tpu.memory_space<vmem>>, vector<64x32xf32>,
    return
  }
}

module attributes {stable_mosaic.version = 11 : i64} {
  func.func @_conv_act_kernel(%arg0: memref<1x1024xbf16, #tpu.memory_space<vmem>>, %arg1: memref<1024x2xbf16, #tpu.memory_space<vmem>>, %arg2: memref<1x2xf32, #tpu.memory_space<vmem>>) attributes {dimension_semantics = [], scalar_prefetch = 0 : i64, scratch_operands = 0 : i64, tpu.core_type = #tpu.core_type<tc>} {
    %c0 = arith.constant 0 : index
    %c0_0 = arith.constant 0 : index
    %0 = vector.load %arg0[%c0, %c0_0] : memref<1x1024xbf16, #tpu.memory_space<vmem>>, vector<1x1024xbf16>
    %c0_1 = arith.constant 0 : index
    %c0_2 = arith.constant 0 : index
    %1 = vector.load %arg1[%c0_1, %c0_2] : memref<1024x2xbf16, #tpu.memory_space<vmem>>, vector<1024x2xbf16>
    %cst = arith.constant dense<0.000000e+00> : vector<1x2xf32>
    %2 = tpu.matmul %0, %1, %cst {dimension_numbers = #tpu.dot_dimension_numbers<[1], [0], [0], [1], [0, 0, 1, 1], [], []>} : vector<1x1024xbf16>, vector<1024x2xbf16>, vector<1x2xf32> -> vector<1x2xf32>
    %cst_3 = arith.constant 0.000000e+00 : f32
    %3 = vector.broadcast %cst_3 : f32 to vector<1x2xf32>
    %4 = arith.subf %3, %2 : vector<1x2xf32>
    %5 = math.exp %4 : vector<1x2xf32>
    %cst_4 = arith.constant 1.000000e+00 : f32
    %6 = vector.broadcast %cst_4 : f32 to vector<1x2xf32>
    %7 = arith.addf %6, %5 : vector<1x2xf32>
    %cst_5 = arith.constant 1.000000e+00 : f32
    %8 = vector.broadcast %cst_5 : f32 to vector<1x2xf32>
    %9 = arith.divf %8, %7 : vector<1x2xf32>
    %c0_6 = arith.constant 0 : index
    %c0_7 = arith.constant 0 : index
    %10 = vector.load %arg2[%c0_6, %c0_7] : memref<1x2xf32, #tpu.memory_space<vmem>>, vector<1x2xf32>
    tpu.vector_store %arg2[%c0_6, %c0_7], %9 {strides = array<i32>} : memref<1x2xf32, #tpu.memory_space<vmem>>, vector<1x2xf32>,
    return
  }
}

</mosaic_0001>

<bundles_post_ra>
// kernel: _lambda_.5
= control target key start
LH: loop header
LB: loop body
LE: loop exit
PB: predicated region body
PF: predicated region fallthrough
CT: control target
= control target key end

     0   :  { %vm301_vm0 = vcmask 392192   ;;  %s1225_s1 = inlined_call_operand.vmem [shape: bf16[48,2048], index: 1, kind: input, shape index: {}]   ;;  %s1226_s0 = inlined_call_operand.vmem [shape: bf16[8,48], index: 0, kind: input, shape index: {}]   ;;  %s1227_s2 = inlined_call_operand.vmem [shape: f32[8,2048], index: 2, kind: output, shape index: {}]  }
   0x1   :  { %v711_v0 = vld [vmem:[%s1225_s1 + $0x100] sm:$0xf]  ;;  %v821_v2 = vld [vmem:[%s1225_s1 + $0x104] sm:$0xf]  ;;  %v719_v5 = vld [vmem:[%s1225_s1 + $0x108] sm:$0xf] }
   0x2   :  { %v829_v1 = vld [vmem:[%s1225_s1 + $0x13c] sm:$0xf0]  ;;  %v713_v4 = vld [vmem:[%s1225_s1 + $0x140] sm:$0xf0]  ;;  %v830_v6 = vld [vmem:[%s1225_s1 + $0x144] sm:$0xf0] }
   0x3   :  { %v712_v3 = vor.u32 %v829_v1, %v711_v0  ;;  %v716_v7 = vor.u32 %v821_v2, %v713_v4  ;;  %v720_v8 = vor.u32 %v830_v6, %v719_v5  ;;  %v822_v9 = vld [vmem:[%s1225_s1 + $0x10c] sm:$0xf]  ;;  %v647_v11 = vld [vmem:[%s1225_s1 + $0x80] sm:$0xf]  ;;  %v805_v14 = vld [vmem:[%s1225_s1 + $0x84] sm:$0xf] }
   0x4   :  { %v721_v10 = vld [vmem:[%s1225_s1 + $0x148] sm:$0xf0]  ;;  %v813_v13 = vld [vmem:[%s1225_s1 + $0xbc] sm:$0xf0]  ;;  %v649_v15 = vld [vmem:[%s1225_s1 + $0xc0] sm:$0xf0] }
   0x5   :  { %310 = vmatpush.bf16.msra.mxu0 %v712_v3  ;;  %v724_v12 = vor.u32 %v822_v9, %v721_v10  ;;  %323 = vmatpush.bf16.msra.mxu1 %v716_v7  ;;  %v648_v16 = vor.u32 %v813_v13, %v647_v11  ;;  %v652_v17 = vor.u32 %v805_v14, %v649_v15  ;;  %v655_v18 = vld [vmem:[%s1225_s1 + $0x88] sm:$0xf]  ;;  %v806_v20 = vld [vmem:[%s1225_s1 + $0x8c] sm:$0xf]  ;;  %v583_v23 = vld [vmem:[%s1225_s1] sm:$0xf] }
   0x6   :  { %336 = vmatpush.bf16.msra.mxu2 %v720_v8  ;;  %v814_v19 = vld [vmem:[%s1225_s1 + $0xc4] sm:$0xf0]  ;;  %v657_v22 = vld [vmem:[%s1225_s1 + $0xc8] sm:$0xf0]  ;;  %v797_v24 = vld [vmem:[%s1225_s1 + $0x3c] sm:$0xf0] }
   0x7   :  { %349 = vmatpush.bf16.msra.mxu3 %v724_v12  ;;  %v656_v21 = vor.u32 %v814_v19, %v655_v18  ;;  %v660_v25 = vor.u32 %v806_v20, %v657_v22  ;;  %v789_v26 = vld [vmem:[%s1225_s1 + $0x4] sm:$0xf]  ;;  %v591_v28 = vld [vmem:[%s1225_s1 + $0x8] sm:$0xf]  ;;  %v584_v29 = vor.u32 %v797_v24, %v583_v23  ;;  %v790_v31 = vld [vmem:[%s1225_s1 + $0xc] sm:$0xf] }
   0x8   :  { %v585_v27 = vld [vmem:[%s1225_s1 + $0x40] sm:$0xf0]  ;;  %v798_v30 = vld [vmem:[%s1225_s1 + $0x44] sm:$0xf0]  ;;  %v593_v32 = vld [vmem:[%s1225_s1 + $0x48] sm:$0xf0] }
   0x9   :  { %311 = vmatpush.bf16.msra.mxu0 %v648_v16  ;;  %324 = vmatpush.bf16.msra.mxu1 %v652_v17  ;;  %v588_v33 = vor.u32 %v789_v26, %v585_v27  ;;  %v592_v34 = vor.u32 %v798_v30, %v591_v28  ;;  %v735_v35 = vld [vmem:[%s1225_s1 + $0x118] sm:$0xf]  ;;  %v596_v37 = vor.u32 %v790_v31, %v593_v32  ;;  %v933_v38 = vld [vmem:[%s1226_s0] sm:$0xf]  ;;  %v824_v40 = vld [vmem:[%s1225_s1 + $0x11c] sm:$0xf] }
   0xa   :  { %337 = vmatpush.bf16.msra.mxu2 %v656_v21  ;;  %v832_v36 = vld [vmem:[%s1225_s1 + $0x154] sm:$0xf0]  ;;  %v737_v41 = vld [vmem:[%s1225_s1 + $0x158] sm:$0xf0]  ;;  %v727_v42 = vld [vmem:[%s1225_s1 + $0x110] sm:$0xf] }
   0xb   :  { %350 = vmatpush.bf16.msra.mxu3 %v660_v25  ;;  %v736_v39 = vor.u32 %v832_v36, %v735_v35  ;;  %v740_v43 = vor.u32 %v824_v40, %v737_v41  ;;  %v831_v44 = vld [vmem:[%s1225_s1 + $0x14c] sm:$0xf0]  ;;  %v823_v45 = vld [vmem:[%s1225_s1 + $0x114] sm:$0xf]  ;;  %v671_v47 = vld [vmem:[%s1225_s1 + $0x98] sm:$0xf] }
   0xc   :  { %v729_v46 = vld [vmem:[%s1225_s1 + $0x150] sm:$0xf0]  ;;  %v816_v48 = vld [vmem:[%s1225_s1 + $0xd4] sm:$0xf0]  ;;  %v808_v49 = vld [vmem:[%s1225_s1 + $0x9c] sm:$0xf]  ;;  %v728_v50 = vor.u32 %v831_v44, %v727_v42 }
   0xd   :  { %312 = vmatpush.bf16.msra.mxu0 %v584_v29  ;;  %325 = vmatpush.bf16.msra.mxu1 %v588_v33  ;;  %v673_v51 = vld [vmem:[%s1225_s1 + $0xd8] sm:$0xf0]  ;;  %v663_v52 = vld [vmem:[%s1225_s1 + $0x90] sm:$0xf]  ;;  %v732_v53 = vor.u32 %v823_v45, %v729_v46  ;;  %v672_v54 = vor.u32 %v816_v48, %v671_v47  ;;  %v807_v56 = vld [vmem:[%s1225_s1 + $0x94] sm:$0xf] }
   0xe   :  { %338 = vmatpush.bf16.msra.mxu2 %v592_v34  ;;  %v815_v55 = vld [vmem:[%s1225_s1 + $0xcc] sm:$0xf0]  ;;  %v665_v57 = vld [vmem:[%s1225_s1 + $0xd0] sm:$0xf0]  ;;  %v676_v58 = vor.u32 %v808_v49, %v673_v51  ;;  %v607_v59 = vld [vmem:[%s1225_s1 + $0x18] sm:$0xf] }
   0xf   :  { %351 = vmatpush.bf16.msra.mxu3 %v596_v37  ;;  %v800_v60 = vld [vmem:[%s1225_s1 + $0x54] sm:$0xf0]  ;;  %v792_v61 = vld [vmem:[%s1225_s1 + $0x1c] sm:$0xf]  ;;  %v599_v63 = vld [vmem:[%s1225_s1 + $0x10] sm:$0xf]  ;;  %v664_v1 = vor.u32 %v815_v55, %v663_v52  ;;  %v668_v5 = vor.u32 %v807_v56, %v665_v57 }
  0x10   :  { %773 = vmatmul.msk.bf16.vlgmr.msra.gmra.mxu0 %vm301_vm0, %v933_v38  ;;  %774 = vmatmul.msk.bf16.vlgmr.msra.gmra.mxu1 %vm301_vm0, %v933_v38  ;;  %v609_v62 = vld [vmem:[%s1225_s1 + $0x58] sm:$0xf0]  ;;  %v799_v0 = vld [vmem:[%s1225_s1 + $0x4c] sm:$0xf0]  ;;  %v791_v2 = vld [vmem:[%s1225_s1 + $0x14] sm:$0xf]  ;;  %v608_v6 = vor.u32 %v800_v60, %v607_v59 }
  0x11   :  { %775 = vmatmul.msk.bf16.vlgmr.msra.gmra.mxu2 %vm301_vm0, %v933_v38  ;;  %362 = vmatpush.bf16.msrb.mxu0 %v728_v50  ;;  %v751_v3 = vld [vmem:[%s1225_s1 + $0x128] sm:$0xf]  ;;  %v601_v7 = vld [vmem:[%s1225_s1 + $0x50] sm:$0xf0]  ;;  %v826_v8 = vld [vmem:[%s1225_s1 + $0x12c] sm:$0xf]  ;;  %v612_v10 = vor.u32 %v792_v61, %v609_v62  ;;  %v600_v19 = vor.u32 %v799_v0, %v599_v63 }
  0x12   :  { %388 = vmatpush.bf16.msrb.mxu2 %v736_v39  ;;  %776 = vmatmul.msk.bf16.vlgmr.msra.gmra.mxu3 %vm301_vm0, %v933_v38  ;;  %v834_v4 = vld [vmem:[%s1225_s1 + $0x164] sm:$0xf0]  ;;  %v753_v9 = vld [vmem:[%s1225_s1 + $0x168] sm:$0xf0]  ;;  %v743_v12 = vld [vmem:[%s1225_s1 + $0x120] sm:$0xf]  ;;  %v604_v22 = vor.u32 %v791_v2, %v601_v7 }
  0x13   :  { %401 = vmatpush.bf16.msrb.mxu3 %v740_v43  ;;  %375 = vmatpush.bf16.msrb.mxu1 %v732_v53  ;;  %v752_v11 = vor.u32 %v834_v4, %v751_v3  ;;  %v833_v13 = vld [vmem:[%s1225_s1 + $0x15c] sm:$0xf0]  ;;  %v825_v14 = vld [vmem:[%s1225_s1 + $0x124] sm:$0xf]  ;;  %v756_v15 = vor.u32 %v826_v8, %v753_v9  ;;  %v687_v17 = vld [vmem:[%s1225_s1 + $0xa8] sm:$0xf] }
  0x14   :  { %v745_v16 = vld [vmem:[%s1225_s1 + $0x160] sm:$0xf0]  ;;  %v818_v18 = vld [vmem:[%s1225_s1 + $0xe4] sm:$0xf0]  ;;  %v810_v20 = vld [vmem:[%s1225_s1 + $0xac] sm:$0xf]  ;;  %v744_v23 = vor.u32 %v833_v13, %v743_v12 }
  0x15   :  { %363 = vmatpush.bf16.msrb.mxu0 %v664_v1  ;;  %v689_v21 = vld [vmem:[%s1225_s1 + $0xe8] sm:$0xf0]  ;;  %v748_v24 = vor.u32 %v825_v14, %v745_v16  ;;  %v688_v25 = vor.u32 %v818_v18, %v687_v17  ;;  %v679_v26 = vld [vmem:[%s1225_s1 + $0xa0] sm:$0xf]  ;;  %v809_v29 = vld [vmem:[%s1225_s1 + $0xa4] sm:$0xf] }
  0x16   :  { %389 = vmatpush.bf16.msrb.mxu2 %v672_v54  ;;  %v817_v27 = vld [vmem:[%s1225_s1 + $0xdc] sm:$0xf0]  ;;  %v692_v28 = vor.u32 %v810_v20, %v689_v21  ;;  %v681_v30 = vld [vmem:[%s1225_s1 + $0xe0] sm:$0xf0]  ;;  %v623_v31 = vld [vmem:[%s1225_s1 + $0x28] sm:$0xf] }
  0x17   :  { %402 = vmatpush.bf16.msrb.mxu3 %v676_v58  ;;  %376 = vmatpush.bf16.msrb.mxu1 %v668_v5  ;;  %v802_v32 = vld [vmem:[%s1225_s1 + $0x64] sm:$0xf0]  ;;  %v680_v33 = vor.u32 %v817_v27, %v679_v26  ;;  %v794_v34 = vld [vmem:[%s1225_s1 + $0x2c] sm:$0xf]  ;;  %v615_v36 = vld [vmem:[%s1225_s1 + $0x20] sm:$0xf]  ;;  %v684_v37 = vor.u32 %v809_v29, %v681_v30 }
  0x18   :  { %v625_v35 = vld [vmem:[%s1225_s1 + $0x68] sm:$0xf0]  ;;  %v801_v39 = vld [vmem:[%s1225_s1 + $0x5c] sm:$0xf0]  ;;  %v793_v40 = vld [vmem:[%s1225_s1 + $0x24] sm:$0xf]  ;;  %v624_v45 = vor.u32 %v802_v32, %v623_v31 }
  0x19   :  { %364 = vmatpush.bf16.msrb.mxu0 %v600_v19  ;;  %v617_v41 = vld [vmem:[%s1225_s1 + $0x60] sm:$0xf0]  ;;  %v767_v42 = vld [vmem:[%s1225_s1 + $0x138] sm:$0xf]  ;;  %v828_v44 = vld [vmem:[%s1225_s1 + $0x13c] sm:$0xf]  ;;  %v628_v49 = vor.u32 %v794_v34, %v625_v35  ;;  %v616_v50 = vor.u32 %v801_v39, %v615_v36 }
  0x1a   :  { %390 = vmatpush.bf16.msrb.mxu2 %v608_v6  ;;  %v836_v43 = vld [vmem:[%s1225_s1 + $0x174] sm:$0xf0]  ;;  %v769_v46 = vld [vmem:[%s1225_s1 + $0x178] sm:$0xf0]  ;;  %v759_v47 = vld [vmem:[%s1225_s1 + $0x130] sm:$0xf]  ;;  %v620_v53 = vor.u32 %v793_v40, %v617_v41 }
  0x1b   :  { %403 = vmatpush.bf16.msrb.mxu3 %v612_v10  ;;  %377 = vmatpush.bf16.msrb.mxu1 %v604_v22  ;;  %v835_v48 = vld [vmem:[%s1225_s1 + $0x16c] sm:$0xf0]  ;;  %v827_v51 = vld [vmem:[%s1225_s1 + $0x134] sm:$0xf]  ;;  %v768_v54 = vor.u32 %v836_v43, %v767_v42  ;;  %v772_v55 = vor.u32 %v828_v44, %v769_v46  ;;  %v703_v57 = vld [vmem:[%s1225_s1 + $0xb8] sm:$0xf] }
  0x1c   :  { %v761_v52 = vld [vmem:[%s1225_s1 + $0x170] sm:$0xf0]  ;;  %v760_v56 = vor.u32 %v835_v48, %v759_v47  ;;  %v820_v58 = vld [vmem:[%s1225_s1 + $0xf4] sm:$0xf0]  ;;  %v812_v59 = vld [vmem:[%s1225_s1 + $0xbc] sm:$0xf] }
  0x1d   :  { %414 = vmatpush.bf16.msra.mxu0 %v744_v23  ;;  %v764_v60 = vor.u32 %v827_v51, %v761_v52  ;;  %v705_v61 = vld [vmem:[%s1225_s1 + $0xf8] sm:$0xf0]  ;;  %v695_v62 = vld [vmem:[%s1225_s1 + $0xb0] sm:$0xf]  ;;  %v811_v0 = vld [vmem:[%s1225_s1 + $0xb4] sm:$0xf]  ;;  %v704_v2 = vor.u32 %v820_v58, %v703_v57 }
  0x1e   :  { %440 = vmatpush.bf16.msra.mxu2 %v752_v11  ;;  %v819_v63 = vld [vmem:[%s1225_s1 + $0xec] sm:$0xf0]  ;;  %v697_v1 = vld [vmem:[%s1225_s1 + $0xf0] sm:$0xf0]  ;;  %v708_v3 = vor.u32 %v812_v59, %v705_v61  ;;  %v639_v5 = vld [vmem:[%s1225_s1 + $0x38] sm:$0xf] }
  0x1f   :  { %453 = vmatpush.bf16.msra.mxu3 %v756_v15  ;;  %427 = vmatpush.bf16.msra.mxu1 %v748_v24  ;;  %v696_v4 = vor.u32 %v819_v63, %v695_v62  ;;  %v804_v6 = vld [vmem:[%s1225_s1 + $0x74] sm:$0xf0]  ;;  %v796_v7 = vld [vmem:[%s1225_s1 + $0x3c] sm:$0xf]  ;;  %v700_v8 = vor.u32 %v811_v0, %v697_v1  ;;  %v631_v10 = vld [vmem:[%s1225_s1 + $0x30] sm:$0xf] }
  0x20   :  { %777 = vmatmul.msk.bf16.vlgmr.msrb.gmra.mxu0 %vm301_vm0, %v933_v38  ;;  %778 = vmatmul.msk.bf16.vlgmr.msrb.gmra.mxu1 %vm301_vm0, %v933_v38  ;;  %v641_v9 = vld [vmem:[%s1225_s1 + $0x78] sm:$0xf0]  ;;  %v803_v11 = vld [vmem:[%s1225_s1 + $0x6c] sm:$0xf0]  ;;  %v795_v12 = vld [vmem:[%s1225_s1 + $0x34] sm:$0xf]  ;;  %v640_v14 = vor.u32 %v804_v6, %v639_v5 }
  0x21   :  { %415 = vmatpush.bf16.msra.mxu0 %v680_v33  ;;  %779 = vmatmul.msk.bf16.vlgmr.msrb.gmra.mxu2 %vm301_vm0, %v933_v38  ;;  %v633_v13 = vld [vmem:[%s1225_s1 + $0x70] sm:$0xf0]  ;;  %v644_v15 = vor.u32 %v796_v7, %v641_v9  ;;  %v632_v16 = vor.u32 %v803_v11, %v631_v10 }
  0x22   :  { %441 = vmatpush.bf16.msra.mxu2 %v688_v25  ;;  %780 = vmatmul.msk.bf16.vlgmr.msrb.gmra.mxu3 %vm301_vm0, %v933_v38  ;;  %v636_v17 = vor.u32 %v795_v12, %v633_v13 }
  0x23   :  { %454 = vmatpush.bf16.msra.mxu3 %v692_v28  ;;  %428 = vmatpush.bf16.msra.mxu1 %v684_v37 }
  0x25   :  { %416 = vmatpush.bf16.msra.mxu0 %v616_v50 }
  0x26   :  { %442 = vmatpush.bf16.msra.mxu2 %v624_v45 }
  0x27   :  { %455 = vmatpush.bf16.msra.mxu3 %v628_v49  ;;  %429 = vmatpush.bf16.msra.mxu1 %v620_v53 }
  0x29   :  { %466 = vmatpush.bf16.msrb.mxu0 %v760_v56 }
  0x2a   :  { %492 = vmatpush.bf16.msrb.mxu2 %v768_v54 }
  0x2b   :  { %505 = vmatpush.bf16.msrb.mxu3 %v772_v55  ;;  %479 = vmatpush.bf16.msrb.mxu1 %v764_v60 }
  0x2d   :  { %467 = vmatpush.bf16.msrb.mxu0 %v696_v4 }
  0x2e   :  { %493 = vmatpush.bf16.msrb.mxu2 %v704_v2 }
  0x2f   :  { %506 = vmatpush.bf16.msrb.mxu3 %v708_v3  ;;  %480 = vmatpush.bf16.msrb.mxu1 %v700_v8 }
  0x30   :  { %781 = vmatmul.msk.bf16.vlgmr.msra.gmra.mxu0 %vm301_vm0, %v933_v38  ;;  %782 = vmatmul.msk.bf16.vlgmr.msra.gmra.mxu1 %vm301_vm0, %v933_v38 }
  0x31   :  { %468 = vmatpush.bf16.msrb.mxu0 %v632_v16  ;;  %783 = vmatmul.msk.bf16.vlgmr.msra.gmra.mxu2 %vm301_vm0, %v933_v38 }
  0x32   :  { %494 = vmatpush.bf16.msrb.mxu2 %v640_v14  ;;  %784 = vmatmul.msk.bf16.vlgmr.msra.gmra.mxu3 %vm301_vm0, %v933_v38 }
  0x33   :  { %507 = vmatpush.bf16.msrb.mxu3 %v644_v15  ;;  %481 = vmatpush.bf16.msrb.mxu1 %v636_v17 }
  0x40   :  { %785 = vmatmul.msk.bf16.vlgmr.msrb.gmra.mxu0 %vm301_vm0, %v933_v38  ;;  %786 = vmatmul.msk.bf16.vlgmr.msrb.gmra.mxu1 %vm301_vm0, %v933_v38 }
  0x41   :  { %787 = vmatmul.msk.bf16.vlgmr.msrb.gmra.mxu2 %vm301_vm0, %v933_v38 }
  0x42   :  { %788 = vmatmul.msk.bf16.vlgmr.msrb.gmra.mxu3 %vm301_vm0, %v933_v38 }
  0x8d   :  { %v314_v18 = vpop.f32.mrf.mxu0  ;;  %v327_v20 = vpop.f32.mrf.mxu1 }
  0x8e   :  { %vm513_vm1 = vcmp.ge.f32.partialorder %v314_v18, 0.0  ;;  %v529_v19 = vmul.f32 0.2, %v314_v18  ;;  %vm514_vm2 = vcmp.ge.f32.partialorder %v327_v20, 0.0  ;;  %v530_v21 = vmul.f32 0.2, %v327_v20 }
  0x90   :  { %v545_v22 = vsel %vm513_vm1, %v314_v18, %v529_v19  ;;  %v546_v23 = vsel %vm514_vm2, %v327_v20, %v530_v21 }
  0x91   :  { %561 = vst [vmem:[%s1227_s2] sm:$0xff] %v545_v22 }
  0x92   :  { %562 = vst [vmem:[%s1227_s2 + $0x8] sm:$0xff] %v546_v23 }
  0x94   :  { %v340_v24 = vpop.f32.mrf.mxu2 }
  0x95   :  { %vm515_vm3 = vcmp.ge.f32.partialorder %v340_v24, 0.0  ;;  %v531_v25 = vmul.f32 0.2, %v340_v24  ;;  %v353_v38 = vpop.f32.mrf.mxu3  ;;  %v316_v26 = vpop.f32.mrf.mxu0 }
  0x96   :  { %vm516_vm4 = vcmp.ge.f32.partialorder %v353_v38, 0.0  ;;  %v532_v27 = vmul.f32 0.2, %v353_v38  ;;  %v329_v28 = vpop.f32.mrf.mxu1 }
  0x97   :  { %v547_v29 = vsel %vm515_vm3, %v340_v24, %v531_v25 }
  0x98   :  { %563 = vst [vmem:[%s1227_s2 + $0x10] sm:$0xff] %v547_v29  ;;  %v548_v30 = vsel %vm516_vm4, %v353_v38, %v532_v27 }
  0x99   :  { %564 = vst [vmem:[%s1227_s2 + $0x18] sm:$0xff] %v548_v30 }
  0x9c   :  { %v342_v31 = vpop.f32.mrf.mxu2 }
  0x9d   :  { %v355_v32 = vpop.f32.mrf.mxu3  ;;  %v366_v33 = vpop.f32.mrf.mxu0 }
  0x9e   :  { %vm517_vm5 = vcmp.ge.f32.partialorder %v366_v33, 0.0  ;;  %v533_v34 = vmul.f32 0.2, %v366_v33  ;;  %v379_v35 = vpop.f32.mrf.mxu1 }
  0x9f   :  { %vm518_vm6 = vcmp.ge.f32.partialorder %v379_v35, 0.0  ;;  %v534_v36 = vmul.f32 0.2, %v379_v35 }
  0xa0   :  { %v549_v37 = vsel %vm517_vm5, %v366_v33, %v533_v34 }
  0xa1   :  { %565 = vst [vmem:[%s1227_s2 + $0x20] sm:$0xff] %v549_v37  ;;  %v550_v39 = vsel %vm518_vm6, %v379_v35, %v534_v36 }
  0xa2   :  { %566 = vst [vmem:[%s1227_s2 + $0x28] sm:$0xff] %v550_v39 }
  0xa4   :  { %v392_v40 = vpop.f32.mrf.mxu2 }
  0xa5   :  { %vm519_vm7 = vcmp.ge.f32.partialorder %v392_v40, 0.0  ;;  %v535_v41 = vmul.f32 0.2, %v392_v40  ;;  %v405_v42 = vpop.f32.mrf.mxu3  ;;  %v368_v43 = vpop.f32.mrf.mxu0 }
  0xa6   :  { %vm520_vm8 = vcmp.ge.f32.partialorder %v405_v42, 0.0  ;;  %v536_v44 = vmul.f32 0.2, %v405_v42  ;;  %v381_v45 = vpop.f32.mrf.mxu1 }
  0xa7   :  { %v551_v46 = vsel %vm519_vm7, %v392_v40, %v535_v41 }
  0xa8   :  { %567 = vst [vmem:[%s1227_s2 + $0x30] sm:$0xff] %v551_v46  ;;  %v552_v47 = vsel %vm520_vm8, %v405_v42, %v536_v44 }
  0xa9   :  { %568 = vst [vmem:[%s1227_s2 + $0x38] sm:$0xff] %v552_v47 }
  0xac   :  { %v394_v48 = vpop.f32.mrf.mxu2 }
  0xad   :  { %v407_v49 = vpop.f32.mrf.mxu3  ;;  %v418_v50 = vpop.f32.mrf.mxu0 }
  0xae   :  { %vm521_vm9 = vcmp.ge.f32.partialorder %v418_v50, 0.0  ;;  %v537_v51 = vmul.f32 0.2, %v418_v50  ;;  %v431_v52 = vpop.f32.mrf.mxu1 }
  0xaf   :  { %vm522_vm10 = vcmp.ge.f32.partialorder %v431_v52, 0.0  ;;  %v538_v53 = vmul.f32 0.2, %v431_v52 }
  0xb0   :  { %v553_v54 = vsel %vm521_vm9, %v418_v50, %v537_v51 }
  0xb1   :  { %569 = vst [vmem:[%s1227_s2 + $0x40] sm:$0xff] %v553_v54  ;;  %v554_v55 = vsel %vm522_vm10, %v431_v52, %v538_v53 }
  0xb2   :  { %570 = vst [vmem:[%s1227_s2 + $0x48] sm:$0xff] %v554_v55 }
  0xb4   :  { %v444_v56 = vpop.f32.mrf.mxu2 }
  0xb5   :  { %vm523_vm11 = vcmp.ge.f32.partialorder %v444_v56, 0.0  ;;  %v539_v57 = vmul.f32 0.2, %v444_v56  ;;  %v457_v58 = vpop.f32.mrf.mxu3  ;;  %v420_v59 = vpop.f32.mrf.mxu0 }
  0xb6   :  { %vm524_vm12 = vcmp.ge.f32.partialorder %v457_v58, 0.0  ;;  %v540_v60 = vmul.f32 0.2, %v457_v58  ;;  %v433_v61 = vpop.f32.mrf.mxu1 }
  0xb7   :  { %v555_v62 = vsel %vm523_vm11, %v444_v56, %v539_v57 }
  0xb8   :  { %571 = vst [vmem:[%s1227_s2 + $0x50] sm:$0xff] %v555_v62  ;;  %v556_v63 = vsel %vm524_vm12, %v457_v58, %v540_v60 }
  0xb9   :  { %572 = vst [vmem:[%s1227_s2 + $0x58] sm:$0xff] %v556_v63 }
  0xbc   :  { %v446_v0 = vpop.f32.mrf.mxu2 }
  0xbd   :  { %v459_v1 = vpop.f32.mrf.mxu3  ;;  %v470_v2 = vpop.f32.mrf.mxu0 }
  0xbe   :  { %vm525_vm13 = vcmp.ge.f32.partialorder %v470_v2, 0.0  ;;  %v541_v3 = vmul.f32 0.2, %v470_v2  ;;  %v483_v4 = vpop.f32.mrf.mxu1 }
  0xbf   :  { %vm526_vm14 = vcmp.ge.f32.partialorder %v483_v4, 0.0  ;;  %v542_v5 = vmul.f32 0.2, %v483_v4 }
  0xc0   :  { %v557_v6 = vsel %vm525_vm13, %v470_v2, %v541_v3 }
  0xc1   :  { %573 = vst [vmem:[%s1227_s2 + $0x60] sm:$0xff] %v557_v6  ;;  %v558_v7 = vsel %vm526_vm14, %v483_v4, %v542_v5 }
  0xc2   :  { %574 = vst [vmem:[%s1227_s2 + $0x68] sm:$0xff] %v558_v7 }
  0xc4   :  { %v496_v8 = vpop.f32.mrf.mxu2 }
  0xc5   :  { %vm527_vm15 = vcmp.ge.f32.partialorder %v496_v8, 0.0  ;;  %v543_v9 = vmul.f32 0.2, %v496_v8  ;;  %v509_v10 = vpop.f32.mrf.mxu3  ;;  %v472_v11 = vpop.f32.mrf.mxu0 }
  0xc6   :  { %vm528_vm0 = vcmp.ge.f32.partialorder %v509_v10, 0.0  ;;  %v544_v12 = vmul.f32 0.2, %v509_v10  ;;  %v485_v13 = vpop.f32.mrf.mxu1 }
  0xc7   :  { %v559_v14 = vsel %vm527_vm15, %v496_v8, %v543_v9 }
  0xc8   :  { %575 = vst [vmem:[%s1227_s2 + $0x70] sm:$0xff] %v559_v14  ;;  %v560_v15 = vsel %vm528_vm0, %v509_v10, %v544_v12 }
  0xc9   :  { %576 = vst [vmem:[%s1227_s2 + $0x78] sm:$0xff] %v560_v15 }
  0xcc   :  { %v498_v16 = vpop.f32.mrf.mxu2 }
  0xcd   :  { %v511_v17 = vpop.f32.mrf.mxu3 }

// kernel: _lambda_.6
= control target key start
LH: loop header
LB: loop body
LE: loop exit
PB: predicated region body
PF: predicated region fallthrough
CT: control target
= control target key end

     0   :  { %s902_s1 = inlined_call_operand.vmem [shape: bf16[128,512], index: 1, kind: input, shape index: {}]   ;;  %s903_s0 = inlined_call_operand.vmem [shape: bf16[16,128], index: 0, kind: input, shape index: {}]   ;;  %s904_s2 = inlined_call_operand.vmem [shape: f32[16,1], index: 2, kind: input, shape index: {}]   ;;  %s905_s3 = inlined_call_operand.vmem [shape: f32[16,1], index: 3, kind: input, shape index: {}]   ;;  %s906_s4 = inlined_call_operand.vmem [shape: f32[16,512], index: 4, kind: output, shape index: {}]  }
   0x1   :  { %v541_v0 = vld [vmem:[%s902_s1 + $0xe0] sm:$0xf]  ;;  %v586_v1 = vld [vmem:[%s902_s1 + $0xec] sm:$0xf0]  ;;  %v584_v2 = vld [vmem:[%s902_s1 + $0xe4] sm:$0xf] }
   0x2   :  { %v542_v3 = vor.u32 %v586_v1, %v541_v0  ;;  %v543_v4 = vld [vmem:[%s902_s1 + $0xf0] sm:$0xf0]  ;;  %v549_v5 = vld [vmem:[%s902_s1 + $0xe8] sm:$0xf]  ;;  %v587_v6 = vld [vmem:[%s902_s1 + $0xf4] sm:$0xf0] }
   0x3   :  { %v546_v7 = vor.u32 %v584_v2, %v543_v4  ;;  %v550_v8 = vor.u32 %v587_v6, %v549_v5  ;;  %v585_v9 = vld [vmem:[%s902_s1 + $0xec] sm:$0xf]  ;;  %v551_v10 = vld [vmem:[%s902_s1 + $0xf8] sm:$0xf0]  ;;  %v525_v11 = vld [vmem:[%s902_s1 + $0xc0] sm:$0xf] }
   0x4   :  { %217 = vmatpush.bf16.msra.mxu0 %v542_v3  ;;  %v554_v12 = vor.u32 %v585_v9, %v551_v10  ;;  %v582_v13 = vld [vmem:[%s902_s1 + $0xcc] sm:$0xf0]  ;;  %v580_v14 = vld [vmem:[%s902_s1 + $0xc4] sm:$0xf]  ;;  %v527_v15 = vld [vmem:[%s902_s1 + $0xd0] sm:$0xf0] }
   0x5   :  { %231 = vmatpush.bf16.msra.mxu1 %v546_v7  ;;  %245 = vmatpush.bf16.msra.mxu2 %v550_v8  ;;  %v526_v16 = vor.u32 %v582_v13, %v525_v11  ;;  %v530_v17 = vor.u32 %v580_v14, %v527_v15  ;;  %v533_v18 = vld [vmem:[%s902_s1 + $0xc8] sm:$0xf]  ;;  %v583_v19 = vld [vmem:[%s902_s1 + $0xd4] sm:$0xf0]  ;;  %v581_v20 = vld [vmem:[%s902_s1 + $0xcc] sm:$0xf] }
   0x6   :  { %259 = vmatpush.bf16.msra.mxu3 %v554_v12  ;;  %v534_v21 = vor.u32 %v583_v19, %v533_v18  ;;  %v535_v22 = vld [vmem:[%s902_s1 + $0xd8] sm:$0xf0]  ;;  %v509_v23 = vld [vmem:[%s902_s1 + $0xa0] sm:$0xf]  ;;  %v578_v24 = vld [vmem:[%s902_s1 + $0xac] sm:$0xf0] }
   0x7   :  { %v538_v25 = vor.u32 %v581_v20, %v535_v22  ;;  %v576_v26 = vld [vmem:[%s902_s1 + $0xa4] sm:$0xf]  ;;  %v511_v27 = vld [vmem:[%s902_s1 + $0xb0] sm:$0xf0]  ;;  %v517_v28 = vld [vmem:[%s902_s1 + $0xa8] sm:$0xf]  ;;  %v510_v29 = vor.u32 %v578_v24, %v509_v23 }
   0x8   :  { %218 = vmatpush.bf16.msra.mxu0 %v526_v16  ;;  %v579_v30 = vld [vmem:[%s902_s1 + $0xb4] sm:$0xf0]  ;;  %v577_v31 = vld [vmem:[%s902_s1 + $0xac] sm:$0xf]  ;;  %v519_v32 = vld [vmem:[%s902_s1 + $0xb8] sm:$0xf0]  ;;  %v514_v33 = vor.u32 %v576_v26, %v511_v27 }
   0x9   :  { %232 = vmatpush.bf16.msra.mxu1 %v530_v17  ;;  %246 = vmatpush.bf16.msra.mxu2 %v534_v21  ;;  %v518_v34 = vor.u32 %v579_v30, %v517_v28  ;;  %v493_v35 = vld [vmem:[%s902_s1 + $0x80] sm:$0xf]  ;;  %v574_v36 = vld [vmem:[%s902_s1 + $0x8c] sm:$0xf0]  ;;  %v572_v37 = vld [vmem:[%s902_s1 + $0x84] sm:$0xf]  ;;  %v522_v38 = vor.u32 %v577_v31, %v519_v32 }
   0xa   :  { %260 = vmatpush.bf16.msra.mxu3 %v538_v25  ;;  %v495_v39 = vld [vmem:[%s902_s1 + $0x90] sm:$0xf0]  ;;  %v501_v40 = vld [vmem:[%s902_s1 + $0x88] sm:$0xf]  ;;  %v575_v41 = vld [vmem:[%s902_s1 + $0x94] sm:$0xf0]  ;;  %v494_v44 = vor.u32 %v574_v36, %v493_v35 }
   0xb   :  { %v573_v42 = vld [vmem:[%s902_s1 + $0x8c] sm:$0xf]  ;;  %v503_v43 = vld [vmem:[%s902_s1 + $0x98] sm:$0xf0]  ;;  %v498_v45 = vor.u32 %v572_v37, %v495_v39  ;;  %v502_v46 = vor.u32 %v575_v41, %v501_v40  ;;  %v477_v47 = vld [vmem:[%s902_s1 + $0x60] sm:$0xf] }
   0xc   :  { %219 = vmatpush.bf16.msra.mxu0 %v510_v29  ;;  %v570_v48 = vld [vmem:[%s902_s1 + $0x6c] sm:$0xf0]  ;;  %v568_v49 = vld [vmem:[%s902_s1 + $0x64] sm:$0xf]  ;;  %v506_v50 = vor.u32 %v573_v42, %v503_v43  ;;  %v479_v51 = vld [vmem:[%s902_s1 + $0x70] sm:$0xf0] }
   0xd   :  { %233 = vmatpush.bf16.msra.mxu1 %v514_v33  ;;  %247 = vmatpush.bf16.msra.mxu2 %v518_v34  ;;  %v485_v52 = vld [vmem:[%s902_s1 + $0x68] sm:$0xf]  ;;  %v571_v53 = vld [vmem:[%s902_s1 + $0x74] sm:$0xf0]  ;;  %v569_v54 = vld [vmem:[%s902_s1 + $0x6c] sm:$0xf]  ;;  %v478_v56 = vor.u32 %v570_v48, %v477_v47  ;;  %v482_v57 = vor.u32 %v568_v49, %v479_v51 }
   0xe   :  { %261 = vmatpush.bf16.msra.mxu3 %v522_v38  ;;  %v487_v55 = vld [vmem:[%s902_s1 + $0x78] sm:$0xf0]  ;;  %v486_v58 = vor.u32 %v571_v53, %v485_v52  ;;  %v461_v59 = vld [vmem:[%s902_s1 + $0x40] sm:$0xf]  ;;  %v566_v60 = vld [vmem:[%s902_s1 + $0x4c] sm:$0xf0] }
   0xf   :  { %v564_v61 = vld [vmem:[%s902_s1 + $0x44] sm:$0xf]  ;;  %v490_v62 = vor.u32 %v569_v54, %v487_v55  ;;  %v463_v63 = vld [vmem:[%s902_s1 + $0x50] sm:$0xf0]  ;;  %v469_v0 = vld [vmem:[%s902_s1 + $0x48] sm:$0xf]  ;;  %v462_v4 = vor.u32 %v566_v60, %v461_v59 }
  0x10   :  { %220 = vmatpush.bf16.msra.mxu0 %v494_v44  ;;  %v567_v1 = vld [vmem:[%s902_s1 + $0x54] sm:$0xf0]  ;;  %v565_v2 = vld [vmem:[%s902_s1 + $0x4c] sm:$0xf]  ;;  %v471_v3 = vld [vmem:[%s902_s1 + $0x58] sm:$0xf0]  ;;  %v466_v5 = vor.u32 %v564_v61, %v463_v63 }
  0x11   :  { %234 = vmatpush.bf16.msra.mxu1 %v498_v45  ;;  %248 = vmatpush.bf16.msra.mxu2 %v502_v46  ;;  %v470_v6 = vor.u32 %v567_v1, %v469_v0  ;;  %v445_v7 = vld [vmem:[%s902_s1 + $0x20] sm:$0xf]  ;;  %v562_v8 = vld [vmem:[%s902_s1 + $0x2c] sm:$0xf0]  ;;  %v560_v9 = vld [vmem:[%s902_s1 + $0x24] sm:$0xf]  ;;  %v474_v10 = vor.u32 %v565_v2, %v471_v3 }
  0x12   :  { %262 = vmatpush.bf16.msra.mxu3 %v506_v50  ;;  %v447_v11 = vld [vmem:[%s902_s1 + $0x30] sm:$0xf0]  ;;  %v453_v12 = vld [vmem:[%s902_s1 + $0x28] sm:$0xf]  ;;  %v563_v13 = vld [vmem:[%s902_s1 + $0x34] sm:$0xf0]  ;;  %v446_v16 = vor.u32 %v562_v8, %v445_v7 }
  0x13   :  { %v561_v14 = vld [vmem:[%s902_s1 + $0x2c] sm:$0xf]  ;;  %v455_v15 = vld [vmem:[%s902_s1 + $0x38] sm:$0xf0]  ;;  %v450_v17 = vor.u32 %v560_v9, %v447_v11  ;;  %v454_v18 = vor.u32 %v563_v13, %v453_v12  ;;  %v429_v19 = vld [vmem:[%s902_s1] sm:$0xf] }
  0x14   :  { %221 = vmatpush.bf16.msra.mxu0 %v478_v56  ;;  %v558_v20 = vld [vmem:[%s902_s1 + $0xc] sm:$0xf0]  ;;  %v556_v21 = vld [vmem:[%s902_s1 + $0x4] sm:$0xf]  ;;  %v458_v22 = vor.u32 %v561_v14, %v455_v15  ;;  %v431_v23 = vld [vmem:[%s902_s1 + $0x10] sm:$0xf0] }
  0x15   :  { %235 = vmatpush.bf16.msra.mxu1 %v482_v57  ;;  %249 = vmatpush.bf16.msra.mxu2 %v486_v58  ;;  %v437_v24 = vld [vmem:[%s902_s1 + $0x8] sm:$0xf]  ;;  %v559_v25 = vld [vmem:[%s902_s1 + $0x14] sm:$0xf0]  ;;  %v557_v26 = vld [vmem:[%s902_s1 + $0xc] sm:$0xf]  ;;  %v430_v28 = vor.u32 %v558_v20, %v429_v19  ;;  %v434_v29 = vor.u32 %v556_v21, %v431_v23 }
  0x16   :  { %263 = vmatpush.bf16.msra.mxu3 %v490_v62  ;;  %v439_v27 = vld [vmem:[%s902_s1 + $0x18] sm:$0xf0]  ;;  %v438_v30 = vor.u32 %v559_v25, %v437_v24  ;;  %v555_v32 = vld [vmem:[%s903_s0] sm:$0xff]  ;;  %v596_v33 = vmov 0   ;;  %v348_v63 = vld [vmem:[%s904_s2 + $0x8] sm:$0xff] }
  0x17   :  { %v442_v31 = vor.u32 %v557_v26, %v439_v27  ;;  %590 = vset.pattern.permute.xlu0 %v596_v33  ;;  %591 = vset.pattern.permute.xlu1 %v596_v33  ;;  %v347_v54 = vld [vmem:[%s904_s2] sm:$0xff]  ;;  %v368_v1 = vld [vmem:[%s905_s3 + $0x8] sm:$0xff] }
  0x18   :  { %222 = vmatpush.bf16.msra.mxu0 %v462_v4  ;;  %589 = vset.pattern.permute.xlu2 %v596_v33  ;;  %v367_v0 = vld [vmem:[%s905_s3] sm:$0xff] }
  0x19   :  { %236 = vmatpush.bf16.msra.mxu1 %v466_v5  ;;  %250 = vmatpush.bf16.msra.mxu2 %v470_v6 }
  0x1a   :  { %264 = vmatpush.bf16.msra.mxu3 %v474_v10  ;;  %351 = vperm.xlu2 %589, %v347_v54  }
  0x1c   :  { %223 = vmatpush.bf16.msra.mxu0 %v446_v16 }
  0x1d   :  { %237 = vmatpush.bf16.msra.mxu1 %v450_v17  ;;  %251 = vmatpush.bf16.msra.mxu2 %v454_v18 }
  0x1e   :  { %265 = vmatpush.bf16.msra.mxu3 %v458_v22 }
  0x20   :  { %224 = vmatpush.bf16.msra.mxu0 %v430_v28 }
  0x21   :  { %238 = vmatpush.bf16.msra.mxu1 %v434_v29  ;;  %252 = vmatpush.bf16.msra.mxu2 %v438_v30 }
  0x22   :  { %266 = vmatpush.bf16.msra.mxu3 %v442_v31  ;;  %356 = vperm.xlu2 %589, %v348_v63  }
  0x23   :  { %225 = vmatmul.bf16.vlgmr.msra.gmra.mxu0 %v555_v32 }
  0x24   :  { %239 = vmatmul.bf16.vlgmr.msra.gmra.mxu1 %v555_v32  ;;  %253 = vmatmul.bf16.vlgmr.msra.gmra.mxu2 %v555_v32 }
  0x25   :  { %267 = vmatmul.bf16.vlgmr.msra.gmra.mxu3 %v555_v32 }
  0x74   :  { %v352_v30 = vpop.permute.xlu2 %351 }
  0xa0   :  { %v817_v34 = vpop.f32.mrf.mxu0 }
  0xa1   :  { %v819_v35 = vpop.f32.mrf.mxu1  ;;  %v285_v36 = vmul.f32 %v817_v34, %v817_v34 }
  0xa2   :  { %v286_v37 = vmul.f32 %v819_v35, %v819_v35  ;;  %v273_v38 = vadd.f32 %v819_v35, %v817_v34 }
  0xa4   :  { %v293_v39 = vadd.f32 %v286_v37, %v285_v36 }
  0xa7   :  { %v827_v40 = vpop.f32.mrf.mxu2 }
  0xa8   :  { %v287_v41 = vmul.f32 %v827_v40, %v827_v40  ;;  %v831_v42 = vpop.f32.mrf.mxu3  ;;  %v274_v43 = vadd.f32 %v273_v38, %v827_v40  ;;  %v834_v44 = vpop.f32.mrf.mxu0 }
  0xa9   :  { %v836_v45 = vpop.f32.mrf.mxu1  ;;  %v288_v46 = vmul.f32 %v831_v42, %v831_v42  ;;  %v289_v49 = vmul.f32 %v834_v44, %v834_v44 }
  0xaa   :  { %v275_v47 = vadd.f32 %v274_v43, %v831_v42  ;;  %v294_v48 = vadd.f32 %v293_v39, %v287_v41  ;;  %v290_v50 = vmul.f32 %v836_v45, %v836_v45  ;;  %v278_v52 = vadd.f32 %v836_v45, %v834_v44 }
  0xac   :  { %276 = vadd.xlane.f32.xlu0 %v275_v47  ;;  %v295_v51 = vadd.f32 %v294_v48, %v288_v46  ;;  %v298_v55 = vadd.f32 %v290_v50, %v289_v49 }
  0xae   :  { %296 = vadd.xlane.f32.xlu1 %v295_v51 }
  0xaf   :  { %v847_v53 = vpop.f32.mrf.mxu2 }
  0xb0   :  { %v279_v56 = vadd.f32 %v278_v52, %v847_v53  ;;  %v291_v57 = vmul.f32 %v847_v53, %v847_v53  ;;  %v855_v58 = vpop.f32.mrf.mxu3 }
  0xb1   :  { %v292_v59 = vmul.f32 %v855_v58, %v855_v58 }
  0xb2   :  { %v280_v60 = vadd.f32 %v279_v56, %v855_v58  ;;  %v299_v61 = vadd.f32 %v298_v55, %v291_v57 }
  0xb4   :  { %281 = vadd.xlane.f32.xlu0 %v280_v60  ;;  %v300_v62 = vadd.f32 %v299_v61, %v292_v59  ;;  %v357_v61 = vpop.permute.xlu2 %356 }
  0xb6   :  { %301 = vadd.xlane.f32.xlu1 %v300_v62 }
  0xc8   :  { %371 = vperm.xlu0 %590, %v367_v0  }
  0xcf   :  { %376 = vperm.xlu1 %591, %v368_v1  }
 0x11f   :  { %v277_v2 = vpop.xlane.xlu0 %276 }
 0x120   :  { %v283_v3 = vmul.f32 0.001953125, %v277_v2 }
 0x121   :  { %v297_v4 = vpop.xlane.xlu1 %296 }
 0x122   :  { %v303_v5 = vmul.f32 0.001953125, %v297_v4  ;;  %v305_v6 = vmul.f32 %v283_v3, %v283_v3  ;;  %v309_v24 = vsub.f32 %v817_v34, %v283_v3  ;;  %v310_v25 = vsub.f32 %v819_v35, %v283_v3 }
 0x123   :  { %v311_v26 = vsub.f32 %v827_v40, %v283_v3  ;;  %v312_v27 = vsub.f32 %v831_v42, %v283_v3 }
 0x124   :  { %v307_v7 = vsub.f32 %v303_v5, %v305_v6 }
 0x126   :  { %v317_v8 = vadd.f32 1e-05, %v307_v7 }
 0x127   :  { %v282_v9 = vpop.xlane.xlu0 %281 }
 0x128   :  { %592 = vrsqrt.f32 %v317_v8  ;;  %v284_v10 = vmul.f32 0.001953125, %v282_v9  ;;  %vm325_vm1 = vweird.f32 %v317_v8 }
 0x129   :  { %v302_v11 = vpop.xlane.xlu1 %301 }
 0x12a   :  { %v304_v12 = vmul.f32 0.001953125, %v302_v11  ;;  %v306_v13 = vmul.f32 %v284_v10, %v284_v10  ;;  %v313_v35 = vsub.f32 %v834_v44, %v284_v10  ;;  %v314_v40 = vsub.f32 %v836_v45, %v284_v10 }
 0x12b   :  { %v315_v51 = vsub.f32 %v847_v53, %v284_v10  ;;  %v316_v52 = vsub.f32 %v855_v58, %v284_v10 }
 0x12c   :  { %v308_v14 = vsub.f32 %v304_v12, %v306_v13 }
 0x12e   :  { %v593_v15 = vpop.eup %592  ;;  %v318_v16 = vadd.f32 1e-05, %v308_v14 }
 0x12f   :  { %v320_v17 = vmul.f32 %v593_v15, %v317_v8  ;;  %vm326_vm0 = vweird.f32 %v593_v15 }
 0x130   :  { %594 = vrsqrt.f32 %v318_v16  ;;  %vm327_vm2 = vmor %vm325_vm1, %vm326_vm0  ;;  %vm335_vm4 = vweird.f32 %v318_v16 }
 0x131   :  { %v321_v18 = vmul.f32 %v593_v15, %v320_v17 }
 0x133   :  { %v322_v19 = vmul.f32 0.5, %v321_v18 }
 0x135   :  { %v323_v20 = vsub.f32 1.5, %v322_v19 }
 0x136   :  { %v595_v21 = vpop.eup %594 }
 0x137   :  { %v324_v22 = vmul.f32 %v593_v15, %v323_v20  ;;  %v330_v23 = vmul.f32 %v595_v21, %v318_v16  ;;  %vm336_vm3 = vweird.f32 %v595_v21 }
 0x138   :  { %vm337_vm5 = vmor %vm335_vm4, %vm336_vm3 }
 0x139   :  { %v328_v28 = vsel %vm327_vm2, %v593_v15, %v324_v22  ;;  %v331_v29 = vmul.f32 %v595_v21, %v330_v23 }
 0x13a   :  { %v339_v31 = vmul.f32 %v328_v28, %v309_v24  ;;  %v340_v32 = vmul.f32 %v328_v28, %v310_v25  ;;  %v341_v33 = vmul.f32 %v328_v28, %v311_v26  ;;  %v342_v36 = vmul.f32 %v328_v28, %v312_v27  ;;  %v372_v38 = vpop.permute.xlu0 %371 }
 0x13b   :  { %v332_v37 = vmul.f32 0.5, %v331_v29 }
 0x13c   :  { %v359_v39 = vmul.f32 %v352_v30, %v339_v31  ;;  %v360_v41 = vmul.f32 %v352_v30, %v340_v32  ;;  %v361_v43 = vmul.f32 %v352_v30, %v341_v33  ;;  %v362_v46 = vmul.f32 %v352_v30, %v342_v36 }
 0x13d   :  { %v333_v34 = vsub.f32 1.5, %v332_v37 }
 0x13e   :  { %v379_v42 = vadd.f32 %v372_v38, %v359_v39  ;;  %v380_v47 = vadd.f32 %v372_v38, %v360_v41  ;;  %v381_v48 = vadd.f32 %v372_v38, %v361_v43  ;;  %v382_v49 = vadd.f32 %v372_v38, %v362_v46 }
 0x13f   :  { %v334_v50 = vmul.f32 %v595_v21, %v333_v34 }
 0x140   :  { %vm387_vm6 = vcmp.ge.f32.partialorder %v379_v42, 0.0  ;;  %vm388_vm7 = vcmp.ge.f32.partialorder %v380_v47, 0.0  ;;  %vm389_vm8 = vcmp.ge.f32.partialorder %v381_v48, 0.0  ;;  %vm390_vm9 = vcmp.ge.f32.partialorder %v382_v49, 0.0 }
 0x141   :  { %v338_v54 = vsel %vm337_vm5, %v595_v21, %v334_v50  ;;  %v395_v55 = vmul.f32 0.2, %v379_v42  ;;  %v396_v44 = vmul.f32 0.2, %v380_v47  ;;  %v397_v56 = vmul.f32 0.2, %v381_v48  ;;  %v377_v1 = vpop.permute.xlu1 %376 }
 0x142   :  { %v343_v45 = vmul.f32 %v338_v54, %v313_v35  ;;  %v344_v57 = vmul.f32 %v338_v54, %v314_v40  ;;  %v345_v59 = vmul.f32 %v338_v54, %v315_v51  ;;  %v346_v60 = vmul.f32 %v338_v54, %v316_v52 }
 0x143   :  { %v398_v62 = vmul.f32 0.2, %v382_v49  ;;  %v403_v63 = vsel %vm387_vm6, %v379_v42, %v395_v55  ;;  %v404_v0 = vsel %vm388_vm7, %v380_v47, %v396_v44  ;;  %v405_v53 = vsel %vm389_vm8, %v381_v48, %v397_v56 }
 0x144   :  { %v363_v58 = vmul.f32 %v357_v61, %v343_v45  ;;  %v364_v2 = vmul.f32 %v357_v61, %v344_v57  ;;  %v365_v3 = vmul.f32 %v357_v61, %v345_v59  ;;  %v366_v4 = vmul.f32 %v357_v61, %v346_v60  ;;  %411 = vst [vmem:[%s906_s4] sm:$0xff] %v403_v63 }
 0x145   :  { %v406_v5 = vsel %vm390_vm9, %v382_v49, %v398_v62  ;;  %412 = vst [vmem:[%s906_s4 + $0x8] sm:$0xff] %v404_v0 }
 0x146   :  { %413 = vst [vmem:[%s906_s4 + $0x10] sm:$0xff] %v405_v53  ;;  %v383_v6 = vadd.f32 %v377_v1, %v363_v58  ;;  %v384_v7 = vadd.f32 %v377_v1, %v364_v2  ;;  %v385_v8 = vadd.f32 %v377_v1, %v365_v3  ;;  %v386_v9 = vadd.f32 %v377_v1, %v366_v4 }
 0x147   :  { %414 = vst [vmem:[%s906_s4 + $0x18] sm:$0xff] %v406_v5 }
 0x148   :  { %vm391_vm10 = vcmp.ge.f32.partialorder %v383_v6, 0.0  ;;  %vm392_vm11 = vcmp.ge.f32.partialorder %v384_v7, 0.0  ;;  %vm393_vm12 = vcmp.ge.f32.partialorder %v385_v8, 0.0  ;;  %vm394_vm13 = vcmp.ge.f32.partialorder %v386_v9, 0.0 }
 0x149   :  { %v399_v10 = vmul.f32 0.2, %v383_v6  ;;  %v400_v11 = vmul.f32 0.2, %v384_v7  ;;  %v401_v12 = vmul.f32 0.2, %v385_v8 }
 0x14a   :  { %v402_v13 = vmul.f32 0.2, %v386_v9 }
 0x14b   :  { %v407_v14 = vsel %vm391_vm10, %v383_v6, %v399_v10  ;;  %v408_v15 = vsel %vm392_vm11, %v384_v7, %v400_v11  ;;  %v409_v16 = vsel %vm393_vm12, %v385_v8, %v401_v12 }
 0x14c   :  { %v410_v17 = vsel %vm394_vm13, %v386_v9, %v402_v13  ;;  %415 = vst [vmem:[%s906_s4 + $0x20] sm:$0xff] %v407_v14 }
 0x14d   :  { %416 = vst [vmem:[%s906_s4 + $0x28] sm:$0xff] %v408_v15 }
 0x14e   :  { %417 = vst [vmem:[%s906_s4 + $0x30] sm:$0xff] %v409_v16 }
 0x14f   :  { %418 = vst [vmem:[%s906_s4 + $0x38] sm:$0xff] %v410_v17 }

// kernel: _lambda_.7
= control target key start
LH: loop header
LB: loop body
LE: loop exit
PB: predicated region body
PF: predicated region fallthrough
CT: control target
= control target key end

     0   :  { %v499_v4 = vmov 0   ;;  %s654_s1 = inlined_call_operand.vmem [shape: bf16[256,128], index: 1, kind: input, shape index: {}]   ;;  %s655_s2 = inlined_call_operand.vmem [shape: f32[32,1], index: 2, kind: input, shape index: {}]   ;;  %s656_s0 = inlined_call_operand.vmem [shape: bf16[32,256], index: 0, kind: input, shape index: {}]   ;;  %s657_s3 = inlined_call_operand.vmem [shape: f32[32,1], index: 3, kind: input, shape index: {}]   ;;  %s658_s4 = inlined_call_operand.vmem [shape: f32[32,128], index: 4, kind: output, shape index: {}]  }
   0x1   :  { %v462_v0 = vld [vmem:[%s654_s1 + $0x38] sm:$0xff]  ;;  %v461_v2 = vld [vmem:[%s654_s1 + $0x30] sm:$0xff]  ;;  %488 = vset.pattern.permute.xlu2 %v499_v4  ;;  %490 = vset.pattern.permute.xlu1 %v499_v4  ;;  %v460_v5 = vld [vmem:[%s654_s1 + $0x28] sm:$0xff] }
   0x2   :  { %v470_v1 = vld [vmem:[%s654_s1 + $0x78] sm:$0xff]  ;;  %169 = vmatpush.bf16.msra.mxu0 %v462_v0  ;;  %471 = vmatpush.bf16.msra.mxu2 %v462_v0  ;;  %v469_v3 = vld [vmem:[%s654_s1 + $0x70] sm:$0xff]  ;;  %v468_v6 = vld [vmem:[%s654_s1 + $0x68] sm:$0xff] }
   0x3   :  { %188 = vmatpush.bf16.msra.mxu1 %v470_v1  ;;  %479 = vmatpush.bf16.msra.mxu3 %v470_v1  ;;  %v295_v7 = vld [vmem:[%s655_s2] sm:$0xff]  ;;  %v458_v10 = vld [vmem:[%s654_s1 + $0x18] sm:$0xff]  ;;  %v457_v12 = vld [vmem:[%s654_s1 + $0x10] sm:$0xff] }
   0x4   :  { %489 = vset.pattern.permute.xlu0 %v499_v4  ;;  %301 = vperm.xlu2 %488, %v295_v7   ;;  %v459_v8 = vld [vmem:[%s654_s1 + $0x20] sm:$0xff]  ;;  %v466_v11 = vld [vmem:[%s654_s1 + $0x58] sm:$0xff]  ;;  %v465_v13 = vld [vmem:[%s654_s1 + $0x50] sm:$0xff] }
   0x5   :  { %v467_v9 = vld [vmem:[%s654_s1 + $0x60] sm:$0xff]  ;;  %v456_v14 = vld [vmem:[%s654_s1 + $0x8] sm:$0xff]  ;;  %v381_v20 = vld [vmem:[%s656_s0 + $0x10] sm:$0xf] }
   0x6   :  { %170 = vmatpush.bf16.msra.mxu0 %v461_v2  ;;  %472 = vmatpush.bf16.msra.mxu2 %v461_v2  ;;  %v464_v15 = vld [vmem:[%s654_s1 + $0x48] sm:$0xff]  ;;  %v455_v16 = vld [vmem:[%s654_s1] sm:$0xff]  ;;  %v454_v21 = vld [vmem:[%s656_s0 + $0x14] sm:$0xf0] }
   0x7   :  { %189 = vmatpush.bf16.msra.mxu1 %v469_v3  ;;  %480 = vmatpush.bf16.msra.mxu3 %v469_v3  ;;  %v463_v17 = vld [vmem:[%s654_s1 + $0x40] sm:$0xff]  ;;  %v452_v19 = vld [vmem:[%s656_s0 + $0x4] sm:$0xf0]  ;;  %v375_v23 = vld [vmem:[%s656_s0 + $0x8] sm:$0xf0]  ;;  %v382_v27 = vor.u32 %v454_v21, %v381_v20 }
   0x8   :  { %v373_v18 = vld [vmem:[%s656_s0] sm:$0xf]  ;;  %v451_v22 = vld [vmem:[%s656_s0 + $0x4] sm:$0xf]  ;;  %v453_v24 = vld [vmem:[%s656_s0 + $0x14] sm:$0xf] }
   0x9   :  { %v383_v25 = vld [vmem:[%s656_s0 + $0x18] sm:$0xf0]  ;;  %v374_v26 = vor.u32 %v452_v19, %v373_v18  ;;  %v378_v28 = vor.u32 %v451_v22, %v375_v23  ;;  %v297_v42 = vld [vmem:[%s655_s2 + $0x10] sm:$0xff]  ;;  %v323_v43 = vld [vmem:[%s657_s3] sm:$0xff] }
   0xa   :  { %171 = vmatpush.bf16.msra.mxu0 %v460_v5  ;;  %473 = vmatpush.bf16.msra.mxu2 %v460_v5  ;;  %v386_v29 = vor.u32 %v453_v24, %v383_v25  ;;  %v298_v41 = vld [vmem:[%s655_s2 + $0x18] sm:$0xff]  ;;  %v324_v44 = vld [vmem:[%s657_s3 + $0x8] sm:$0xff]  ;;  %v325_v51 = vld [vmem:[%s657_s3 + $0x10] sm:$0xff] }
   0xb   :  { %190 = vmatpush.bf16.msra.mxu1 %v468_v6  ;;  %481 = vmatpush.bf16.msra.mxu3 %v468_v6  ;;  %v296_v45 = vld [vmem:[%s655_s2 + $0x8] sm:$0xff]  ;;  %v326_v53 = vld [vmem:[%s657_s3 + $0x18] sm:$0xff] }
   0xe   :  { %172 = vmatpush.bf16.msra.mxu0 %v459_v8  ;;  %474 = vmatpush.bf16.msra.mxu2 %v459_v8 }
   0xf   :  { %191 = vmatpush.bf16.msra.mxu1 %v467_v9  ;;  %482 = vmatpush.bf16.msra.mxu3 %v467_v9 }
  0x12   :  { %173 = vmatpush.bf16.msra.mxu0 %v458_v10  ;;  %475 = vmatpush.bf16.msra.mxu2 %v458_v10 }
  0x13   :  { %192 = vmatpush.bf16.msra.mxu1 %v466_v11  ;;  %483 = vmatpush.bf16.msra.mxu3 %v466_v11 }
  0x16   :  { %174 = vmatpush.bf16.msra.mxu0 %v457_v12  ;;  %476 = vmatpush.bf16.msra.mxu2 %v457_v12 }
  0x17   :  { %193 = vmatpush.bf16.msra.mxu1 %v465_v13  ;;  %484 = vmatpush.bf16.msra.mxu3 %v465_v13 }
  0x1a   :  { %175 = vmatpush.bf16.msra.mxu0 %v456_v14  ;;  %477 = vmatpush.bf16.msra.mxu2 %v456_v14 }
  0x1b   :  { %194 = vmatpush.bf16.msra.mxu1 %v464_v15  ;;  %485 = vmatpush.bf16.msra.mxu3 %v464_v15 }
  0x1e   :  { %176 = vmatpush.bf16.msra.mxu0 %v455_v16  ;;  %478 = vmatpush.bf16.msra.mxu2 %v455_v16 }
  0x1f   :  { %195 = vmatpush.bf16.msra.mxu1 %v463_v17  ;;  %486 = vmatpush.bf16.msra.mxu3 %v463_v17 }
  0x21   :  { %177 = vmatmul.bf16.vlgmr.msra.gmra.mxu0 %v374_v26  ;;  %182 = vmatmul.bf16.vlgmr.msra.gmra.mxu2 %v382_v27 }
  0x22   :  { %196 = vmatmul.bf16.vlgmr.msra.gmra.mxu1 %v378_v28  ;;  %201 = vmatmul.bf16.vlgmr.msra.gmra.mxu3 %v386_v29 }
  0x5e   :  { %v302_v52 = vpop.permute.xlu2 %301 }
  0x9e   :  { %v178_v30 = vpop.f32.mrf.mxu0 }
  0x9f   :  { %v197_v31 = vpop.f32.mrf.mxu1 }
  0xa0   :  { %v198_v32 = vadd.f32 %v197_v31, %v178_v30 }
  0xa2   :  { %207 = vadd.xlane.f32.xlu0 %v198_v32  ;;  %v219_v33 = vmul.f32 %v198_v32, %v198_v32 }
  0xa4   :  { %223 = vadd.xlane.f32.xlu2 %v219_v33  ;;  %v183_v34 = vpop.f32.mrf.mxu2 }
  0xa5   :  { %v202_v35 = vpop.f32.mrf.mxu3 }
  0xa6   :  { %v600_v36 = vadd.f32 %v202_v35, %v183_v34  ;;  %v180_v37 = vpop.f32.mrf.mxu0 }
  0xa7   :  { %v199_v38 = vpop.f32.mrf.mxu1 }
  0xa8   :  { %v602_v39 = vadd.f32 %v199_v38, %v180_v37  ;;  %211 = vadd.xlane.f32.xlu1 %v600_v36  ;;  %v221_v40 = vmul.f32 %v600_v36, %v600_v36 }
  0xaa   :  { %209 = vadd.xlane.f32.xlu0 %v602_v39  ;;  %v220_v46 = vmul.f32 %v602_v39, %v602_v39 }
  0xac   :  { %v185_v47 = vpop.f32.mrf.mxu2 }
  0xad   :  { %v204_v48 = vpop.f32.mrf.mxu3 }
  0xae   :  { %v625_v49 = vadd.f32 %v204_v48, %v185_v47 }
  0xb0   :  { %v222_v50 = vmul.f32 %v625_v49, %v625_v49 }
  0xb2   :  { %227 = vadd.xlane.f32.xlu0 %v221_v40 }
  0xbc   :  { %316 = vperm.xlu2 %488, %v298_v41  }
  0xc1   :  { %311 = vperm.xlu1 %490, %v297_v42  }
  0xc4   :  { %329 = vperm.xlu2 %488, %v323_v43  }
  0xc6   :  { %306 = vperm.xlu0 %489, %v296_v45  }
  0xc9   :  { %334 = vperm.xlu1 %490, %v324_v44  }
  0xed   :  { %225 = vadd.xlane.f32.xlu2 %v220_v46 }
  0xf3   :  { %213 = vadd.xlane.f32.xlu1 %v625_v49 }
  0xfb   :  { %229 = vadd.xlane.f32.xlu1 %v222_v50 }
 0x105   :  { %339 = vperm.xlu2 %488, %v325_v51  }
 0x114   :  { %344 = vperm.xlu1 %490, %v326_v53  }
 0x115   :  { %v208_v54 = vpop.xlane.xlu0 %207 }
 0x116   :  { %v215_v55 = vmul.f32 0.0078125, %v208_v54 }
 0x117   :  { %v224_v56 = vpop.xlane.xlu2 %223 }
 0x118   :  { %v235_v57 = vmul.f32 %v215_v55, %v215_v55  ;;  %v231_v58 = vmul.f32 0.0078125, %v224_v56  ;;  %v243_v5 = vsub.f32 %v198_v32, %v215_v55 }
 0x11a   :  { %v239_v59 = vsub.f32 %v231_v58, %v235_v57 }
 0x11b   :  { %v212_v8 = vpop.xlane.xlu1 %211 }
 0x11c   :  { %v247_v60 = vadd.f32 1e-05, %v239_v59  ;;  %v217_v13 = vmul.f32 0.0078125, %v212_v8 }
 0x11d   :  { %v210_v2 = vpop.xlane.xlu0 %209 }
 0x11e   :  { %491 = vrsqrt.f32 %v247_v60  ;;  %vm257_vm0 = vweird.f32 %v247_v60  ;;  %v237_v17 = vmul.f32 %v217_v13, %v217_v13  ;;  %v216_v28 = vmul.f32 0.0078125, %v210_v2 }
 0x11f   :  { %v636_v1 = vpop.permute.xlu2 %316  ;;  %v245_v31 = vsub.f32 %v600_v36, %v217_v13 }
 0x120   :  { %v236_v32 = vmul.f32 %v216_v28, %v216_v28  ;;  %v244_v57 = vsub.f32 %v602_v39, %v216_v28 }
 0x124   :  { %v492_v61 = vpop.eup %491 }
 0x125   :  { %v252_v62 = vmul.f32 %v492_v61, %v247_v60  ;;  %vm258_vm1 = vweird.f32 %v492_v61  ;;  %v228_v11 = vpop.xlane.xlu0 %227 }
 0x126   :  { %vm259_vm2 = vmor %vm257_vm0, %vm258_vm1  ;;  %v233_v15 = vmul.f32 0.0078125, %v228_v11 }
 0x127   :  { %v253_v63 = vmul.f32 %v492_v61, %v252_v62  ;;  %v330_v10 = vpop.permute.xlu2 %329 }
 0x128   :  { %v241_v18 = vsub.f32 %v233_v15, %v237_v17 }
 0x129   :  { %v254_v0 = vmul.f32 0.5, %v253_v63 }
 0x12a   :  { %v249_v19 = vadd.f32 1e-05, %v241_v18 }
 0x12b   :  { %v255_v3 = vsub.f32 1.5, %v254_v0 }
 0x12c   :  { %493 = vrsqrt.f32 %v249_v19  ;;  %vm277_vm5 = vweird.f32 %v249_v19 }
 0x12d   :  { %v256_v4 = vmul.f32 %v492_v61, %v255_v3 }
 0x12f   :  { %v260_v6 = vsel %vm259_vm2, %v492_v61, %v256_v4 }
 0x130   :  { %v291_v7 = vmul.f32 %v260_v6, %v243_v5 }
 0x132   :  { %v319_v9 = vmul.f32 %v302_v52, %v291_v7  ;;  %v494_v20 = vpop.eup %493 }
 0x133   :  { %v272_v21 = vmul.f32 %v494_v20, %v249_v19  ;;  %v312_v24 = vpop.permute.xlu1 %311  ;;  %vm278_vm4 = vweird.f32 %v494_v20 }
 0x134   :  { %v347_v12 = vadd.f32 %v330_v10, %v319_v9  ;;  %vm279_vm6 = vmor %vm277_vm5, %vm278_vm4 }
 0x135   :  { %v273_v22 = vmul.f32 %v494_v20, %v272_v21 }
 0x136   :  { %vm351_vm3 = vcmp.ge.f32.partialorder %v347_v12, 0.0  ;;  %v355_v14 = vmul.f32 0.2, %v347_v12 }
 0x137   :  { %v274_v23 = vmul.f32 0.5, %v273_v22 }
 0x138   :  { %v359_v16 = vsel %vm351_vm3, %v347_v12, %v355_v14  ;;  %v307_v58 = vpop.permute.xlu0 %306 }
 0x139   :  { %363 = vst [vmem:[%s658_s4] sm:$0xff] %v359_v16  ;;  %v275_v25 = vsub.f32 1.5, %v274_v23 }
 0x13b   :  { %v276_v26 = vmul.f32 %v494_v20, %v275_v25  ;;  %v335_v27 = vpop.permute.xlu1 %334 }
 0x13d   :  { %v280_v29 = vsel %vm279_vm6, %v494_v20, %v276_v26 }
 0x13e   :  { %v293_v34 = vmul.f32 %v280_v29, %v245_v31 }
 0x140   :  { %v321_v40 = vmul.f32 %v312_v24, %v293_v34 }
 0x160   :  { %v226_v30 = vpop.xlane.xlu2 %225 }
 0x161   :  { %v232_v33 = vmul.f32 0.0078125, %v226_v30 }
 0x163   :  { %v240_v35 = vsub.f32 %v232_v33, %v236_v32 }
 0x165   :  { %v248_v37 = vadd.f32 1e-05, %v240_v35 }
 0x166   :  { %v214_v38 = vpop.xlane.xlu1 %213 }
 0x167   :  { %495 = vrsqrt.f32 %v248_v37  ;;  %v218_v43 = vmul.f32 0.0078125, %v214_v38  ;;  %vm267_vm9 = vweird.f32 %v248_v37 }
 0x168   :  { %v340_v41 = vpop.permute.xlu2 %339 }
 0x169   :  { %v349_v42 = vadd.f32 %v340_v41, %v321_v40  ;;  %v238_v48 = vmul.f32 %v218_v43, %v218_v43  ;;  %v246_v7 = vsub.f32 %v625_v49, %v218_v43 }
 0x16b   :  { %vm353_vm7 = vcmp.ge.f32.partialorder %v349_v42, 0.0  ;;  %v357_v44 = vmul.f32 0.2, %v349_v42 }
 0x16d   :  { %v496_v45 = vpop.eup %495  ;;  %v361_v46 = vsel %vm353_vm7, %v349_v42, %v357_v44 }
 0x16e   :  { %v262_v47 = vmul.f32 %v496_v45, %v248_v37  ;;  %365 = vst [vmem:[%s658_s4 + $0x10] sm:$0xff] %v361_v46  ;;  %v230_v36 = vpop.xlane.xlu1 %229  ;;  %vm268_vm8 = vweird.f32 %v496_v45 }
 0x16f   :  { %v234_v50 = vmul.f32 0.0078125, %v230_v36  ;;  %vm269_vm10 = vmor %vm267_vm9, %vm268_vm8 }
 0x170   :  { %v263_v51 = vmul.f32 %v496_v45, %v262_v47 }
 0x171   :  { %v242_v52 = vsub.f32 %v234_v50, %v238_v48 }
 0x172   :  { %v264_v53 = vmul.f32 0.5, %v263_v51 }
 0x173   :  { %v250_v54 = vadd.f32 1e-05, %v242_v52 }
 0x174   :  { %v265_v55 = vsub.f32 1.5, %v264_v53 }
 0x175   :  { %497 = vrsqrt.f32 %v250_v54  ;;  %vm287_vm13 = vweird.f32 %v250_v54 }
 0x176   :  { %v266_v56 = vmul.f32 %v496_v45, %v265_v55 }
 0x178   :  { %v270_v59 = vsel %vm269_vm10, %v496_v45, %v266_v56 }
 0x179   :  { %v292_v60 = vmul.f32 %v270_v59, %v244_v57 }
 0x17b   :  { %v498_v61 = vpop.eup %497  ;;  %v320_v62 = vmul.f32 %v307_v58, %v292_v60 }
 0x17c   :  { %v282_v63 = vmul.f32 %v498_v61, %v250_v54  ;;  %vm288_vm12 = vweird.f32 %v498_v61 }
 0x17d   :  { %v348_v0 = vadd.f32 %v335_v27, %v320_v62  ;;  %vm289_vm14 = vmor %vm287_vm13, %vm288_vm12 }
 0x17e   :  { %v283_v2 = vmul.f32 %v498_v61, %v282_v63 }
 0x17f   :  { %vm352_vm11 = vcmp.ge.f32.partialorder %v348_v0, 0.0  ;;  %v356_v3 = vmul.f32 0.2, %v348_v0 }
 0x180   :  { %v284_v4 = vmul.f32 0.5, %v283_v2 }
 0x181   :  { %v360_v5 = vsel %vm352_vm11, %v348_v0, %v356_v3 }
 0x182   :  { %v285_v6 = vsub.f32 1.5, %v284_v4  ;;  %364 = vst [vmem:[%s658_s4 + $0x8] sm:$0xff] %v360_v5 }
 0x184   :  { %v286_v39 = vmul.f32 %v498_v61, %v285_v6 }
 0x186   :  { %v290_v8 = vsel %vm289_vm14, %v498_v61, %v286_v39  ;;  %v345_v11 = vpop.permute.xlu1 %344 }
 0x187   :  { %v294_v9 = vmul.f32 %v290_v8, %v246_v7 }
 0x189   :  { %v322_v10 = vmul.f32 %v636_v1, %v294_v9 }
 0x18b   :  { %v350_v12 = vadd.f32 %v345_v11, %v322_v10 }
 0x18d   :  { %vm354_vm15 = vcmp.ge.f32.partialorder %v350_v12, 0.0  ;;  %v358_v13 = vmul.f32 0.2, %v350_v12 }
 0x18f   :  { %v362_v14 = vsel %vm354_vm15, %v350_v12, %v358_v13 }
 0x190   :  { %366 = vst [vmem:[%s658_s4 + $0x18] sm:$0xff] %v362_v14 }

// kernel: _lambda_.8
= control target key start
LH: loop header
LB: loop body
LE: loop exit
PB: predicated region body
PF: predicated region fallthrough
CT: control target
= control target key end

     0   :  { %v1086_v58 = vmov 0   ;;  %vm485_vm0 = vcmask 261120   ;;  %s1528_s1 = inlined_call_operand.vmem [shape: bf16[512,32], index: 1, kind: input, shape index: {}]   ;;  %s1529_s0 = inlined_call_operand.vmem [shape: bf16[64,512], index: 0, kind: input, shape index: {}]   ;;  %s1530_s2 = inlined_call_operand.vmem [shape: f32[64,1], index: 2, kind: input, shape index: {}]   ;;  %s1531_s3 = inlined_call_operand.vmem [shape: f32[64,1], index: 3, kind: input, shape index: {}]   ;;  %s1532_s4 = inlined_call_operand.vmem [shape: f32[64,32], index: 4, kind: output, shape index: {}]  }
   0x1   :  { %v1041_v0 = vld [vmem:[%s1528_s1 + $0x38] sm:$0xff]  ;;  %v1040_v4 = vld [vmem:[%s1528_s1 + $0x30] sm:$0xff]  ;;  %v1039_v8 = vld [vmem:[%s1528_s1 + $0x28] sm:$0xff]  ;;  %1067 = vset.pattern.permute.xlu1 %v1086_v58  ;;  %1068 = vset.pattern.permute.xlu2 %v1086_v58 }
   0x2   :  { %v1049_v1 = vld [vmem:[%s1528_s1 + $0x78] sm:$0xff]  ;;  %369 = vmatpush.bf16.msra.mxu0 %v1041_v0  ;;  %v1048_v5 = vld [vmem:[%s1528_s1 + $0x70] sm:$0xff]  ;;  %v1047_v9 = vld [vmem:[%s1528_s1 + $0x68] sm:$0xff]  ;;  %1069 = vset.pattern.permute.xlu0 %v1086_v58 }
   0x3   :  { %v1057_v2 = vld [vmem:[%s1528_s1 + $0xb8] sm:$0xff]  ;;  %398 = vmatpush.bf16.msra.mxu1 %v1049_v1  ;;  %v1056_v6 = vld [vmem:[%s1528_s1 + $0xb0] sm:$0xff]  ;;  %v1055_v10 = vld [vmem:[%s1528_s1 + $0xa8] sm:$0xff] }
   0x4   :  { %v1065_v3 = vld [vmem:[%s1528_s1 + $0xf8] sm:$0xff]  ;;  %427 = vmatpush.bf16.msra.mxu2 %v1057_v2  ;;  %v1064_v7 = vld [vmem:[%s1528_s1 + $0xf0] sm:$0xff]  ;;  %v1063_v11 = vld [vmem:[%s1528_s1 + $0xe8] sm:$0xff] }
   0x5   :  { %456 = vmatpush.bf16.msra.mxu3 %v1065_v3  ;;  %v1038_v12 = vld [vmem:[%s1528_s1 + $0x20] sm:$0xff]  ;;  %v1037_v16 = vld [vmem:[%s1528_s1 + $0x18] sm:$0xff]  ;;  %v1036_v20 = vld [vmem:[%s1528_s1 + $0x10] sm:$0xff] }
   0x6   :  { %370 = vmatpush.bf16.msra.mxu0 %v1040_v4  ;;  %v1046_v13 = vld [vmem:[%s1528_s1 + $0x60] sm:$0xff]  ;;  %v1045_v17 = vld [vmem:[%s1528_s1 + $0x58] sm:$0xff]  ;;  %v1044_v21 = vld [vmem:[%s1528_s1 + $0x50] sm:$0xff] }
   0x7   :  { %399 = vmatpush.bf16.msra.mxu1 %v1048_v5  ;;  %v1054_v14 = vld [vmem:[%s1528_s1 + $0xa0] sm:$0xff]  ;;  %v1053_v18 = vld [vmem:[%s1528_s1 + $0x98] sm:$0xff]  ;;  %v1052_v22 = vld [vmem:[%s1528_s1 + $0x90] sm:$0xff] }
   0x8   :  { %428 = vmatpush.bf16.msra.mxu2 %v1056_v6  ;;  %v1062_v15 = vld [vmem:[%s1528_s1 + $0xe0] sm:$0xff]  ;;  %v1061_v19 = vld [vmem:[%s1528_s1 + $0xd8] sm:$0xff]  ;;  %v1060_v23 = vld [vmem:[%s1528_s1 + $0xd0] sm:$0xff] }
   0x9   :  { %457 = vmatpush.bf16.msra.mxu3 %v1064_v7  ;;  %v1035_v24 = vld [vmem:[%s1528_s1 + $0x8] sm:$0xff]  ;;  %v1034_v28 = vld [vmem:[%s1528_s1] sm:$0xff]  ;;  %v1020_v33 = vld [vmem:[%s1529_s0 + $0xc] sm:$0xf0] }
   0xa   :  { %371 = vmatpush.bf16.msra.mxu0 %v1039_v8  ;;  %v1043_v25 = vld [vmem:[%s1528_s1 + $0x48] sm:$0xff]  ;;  %v1042_v29 = vld [vmem:[%s1528_s1 + $0x40] sm:$0xff]  ;;  %v830_v35 = vld [vmem:[%s1529_s0 + $0x10] sm:$0xf0] }
   0xb   :  { %400 = vmatpush.bf16.msra.mxu1 %v1047_v9  ;;  %v1051_v26 = vld [vmem:[%s1528_s1 + $0x88] sm:$0xff]  ;;  %v1050_v30 = vld [vmem:[%s1528_s1 + $0x80] sm:$0xff]  ;;  %v1021_v37 = vld [vmem:[%s1529_s0 + $0x14] sm:$0xf0] }
   0xc   :  { %429 = vmatpush.bf16.msra.mxu2 %v1055_v10  ;;  %v1059_v27 = vld [vmem:[%s1528_s1 + $0xc8] sm:$0xff]  ;;  %v1058_v31 = vld [vmem:[%s1528_s1 + $0xc0] sm:$0xff]  ;;  %v838_v39 = vld [vmem:[%s1529_s0 + $0x18] sm:$0xf0] }
   0xd   :  { %458 = vmatpush.bf16.msra.mxu3 %v1063_v11  ;;  %v828_v32 = vld [vmem:[%s1529_s0] sm:$0xf]  ;;  %v1018_v34 = vld [vmem:[%s1529_s0 + $0x4] sm:$0xf]  ;;  %v836_v36 = vld [vmem:[%s1529_s0 + $0x8] sm:$0xf] }
   0xe   :  { %372 = vmatpush.bf16.msra.mxu0 %v1038_v12  ;;  %v1019_v38 = vld [vmem:[%s1529_s0 + $0xc] sm:$0xf]  ;;  %v829_v40 = vor.u32 %v1020_v33, %v828_v32  ;;  %v833_v41 = vor.u32 %v1018_v34, %v830_v35  ;;  %v837_v42 = vor.u32 %v1021_v37, %v836_v36  ;;  %v844_v44 = vld [vmem:[%s1529_s0 + $0x20] sm:$0xf]  ;;  %v1024_v45 = vld [vmem:[%s1529_s0 + $0x2c] sm:$0xf0] }
   0xf   :  { %401 = vmatpush.bf16.msra.mxu1 %v1046_v13  ;;  %v841_v43 = vor.u32 %v1019_v38, %v838_v39  ;;  %v1022_v46 = vld [vmem:[%s1529_s0 + $0x24] sm:$0xf]  ;;  %v846_v47 = vld [vmem:[%s1529_s0 + $0x30] sm:$0xf0]  ;;  %v852_v48 = vld [vmem:[%s1529_s0 + $0x28] sm:$0xf]  ;;  %v845_v52 = vor.u32 %v1024_v45, %v844_v44 }
  0x10   :  { %430 = vmatpush.bf16.msra.mxu2 %v1054_v14  ;;  %v1025_v49 = vld [vmem:[%s1529_s0 + $0x34] sm:$0xf0]  ;;  %v1023_v50 = vld [vmem:[%s1529_s0 + $0x2c] sm:$0xf]  ;;  %v854_v51 = vld [vmem:[%s1529_s0 + $0x38] sm:$0xf0]  ;;  %v849_v53 = vor.u32 %v1022_v46, %v846_v47 }
  0x11   :  { %459 = vmatpush.bf16.msra.mxu3 %v1062_v15  ;;  %v853_v54 = vor.u32 %v1025_v49, %v852_v48  ;;  %v857_v55 = vor.u32 %v1023_v50, %v854_v51  ;;  %v678_v56 = vld [vmem:[%s1530_s2] sm:$0xff]  ;;  %v679_v57 = vld [vmem:[%s1530_s2 + $0x8] sm:$0xff]  ;;  %v680_v59 = vld [vmem:[%s1530_s2 + $0x10] sm:$0xff] }
  0x12   :  { %373 = vmatpush.bf16.msra.mxu0 %v1037_v16  ;;  %688 = vperm.xlu1 %1067, %v678_v56   ;;  %v860_v60 = vld [vmem:[%s1529_s0 + $0x40] sm:$0xf]  ;;  %v1028_v61 = vld [vmem:[%s1529_s0 + $0x4c] sm:$0xf0]  ;;  %v1026_v62 = vld [vmem:[%s1529_s0 + $0x44] sm:$0xf] }
  0x13   :  { %402 = vmatpush.bf16.msra.mxu1 %v1045_v17  ;;  %693 = vperm.xlu2 %1068, %v679_v57   ;;  %v682_v63 = vld [vmem:[%s1530_s2 + $0x20] sm:$0xff]  ;;  %v681_v0 = vld [vmem:[%s1530_s2 + $0x18] sm:$0xff]  ;;  %v862_v1 = vld [vmem:[%s1529_s0 + $0x50] sm:$0xf0]  ;;  %v861_v7 = vor.u32 %v1028_v61, %v860_v60 }
  0x14   :  { %431 = vmatpush.bf16.msra.mxu2 %v1053_v18  ;;  %698 = vperm.xlu0 %1069, %v680_v59   ;;  %v868_v2 = vld [vmem:[%s1529_s0 + $0x48] sm:$0xf]  ;;  %v1029_v3 = vld [vmem:[%s1529_s0 + $0x54] sm:$0xf0]  ;;  %v1027_v4 = vld [vmem:[%s1529_s0 + $0x4c] sm:$0xf]  ;;  %v865_v8 = vor.u32 %v1026_v62, %v862_v1 }
  0x15   :  { %460 = vmatpush.bf16.msra.mxu3 %v1061_v19  ;;  %v870_v5 = vld [vmem:[%s1529_s0 + $0x58] sm:$0xf0]  ;;  %v735_v6 = vld [vmem:[%s1531_s3 + $0x8] sm:$0xff]  ;;  %v869_v9 = vor.u32 %v1029_v3, %v868_v2  ;;  %v684_v11 = vld [vmem:[%s1530_s2 + $0x30] sm:$0xff] }
  0x16   :  { %374 = vmatpush.bf16.msra.mxu0 %v1036_v20  ;;  %v873_v10 = vor.u32 %v1027_v4, %v870_v5  ;;  %v683_v12 = vld [vmem:[%s1530_s2 + $0x28] sm:$0xff]  ;;  %v738_v13 = vld [vmem:[%s1531_s3 + $0x20] sm:$0xff]  ;;  %v1032_v15 = vld [vmem:[%s1529_s0 + $0x6c] sm:$0xf0] }
  0x17   :  { %403 = vmatpush.bf16.msra.mxu1 %v1044_v21  ;;  %v876_v14 = vld [vmem:[%s1529_s0 + $0x60] sm:$0xf]  ;;  %v685_v17 = vld [vmem:[%s1530_s2 + $0x38] sm:$0xff]  ;;  %v1030_v18 = vld [vmem:[%s1529_s0 + $0x64] sm:$0xf] }
  0x18   :  { %432 = vmatpush.bf16.msra.mxu2 %v1052_v22  ;;  %v734_v16 = vld [vmem:[%s1531_s3] sm:$0xff]  ;;  %v878_v19 = vld [vmem:[%s1529_s0 + $0x70] sm:$0xf0]  ;;  %v884_v20 = vld [vmem:[%s1529_s0 + $0x68] sm:$0xf] }
  0x19   :  { %461 = vmatpush.bf16.msra.mxu3 %v1060_v23  ;;  %v1033_v21 = vld [vmem:[%s1529_s0 + $0x74] sm:$0xf0]  ;;  %v1031_v22 = vld [vmem:[%s1529_s0 + $0x6c] sm:$0xf]  ;;  %v886_v23 = vld [vmem:[%s1529_s0 + $0x78] sm:$0xf0] }
  0x1a   :  { %375 = vmatpush.bf16.msra.mxu0 %v1035_v24  ;;  %708 = vperm.xlu1 %1067, %v682_v63   ;;  %v877_v24 = vor.u32 %v1032_v15, %v876_v14 }
  0x1b   :  { %404 = vmatpush.bf16.msra.mxu1 %v1043_v25  ;;  %703 = vperm.xlu2 %1068, %v681_v0   ;;  %v881_v25 = vor.u32 %v1030_v18, %v878_v19 }
  0x1c   :  { %433 = vmatpush.bf16.msra.mxu2 %v1051_v26  ;;  %749 = vperm.xlu0 %1069, %v735_v6   ;;  %v885_v26 = vor.u32 %v1033_v21, %v884_v20 }
  0x1d   :  { %462 = vmatpush.bf16.msra.mxu3 %v1059_v27  ;;  %v889_v27 = vor.u32 %v1031_v22, %v886_v23 }
  0x1e   :  { %376 = vmatpush.bf16.msra.mxu0 %v1034_v28  ;;  %v737_v28 = vld [vmem:[%s1531_s3 + $0x18] sm:$0xff] }
  0x1f   :  { %405 = vmatpush.bf16.msra.mxu1 %v1042_v29  ;;  %v736_v29 = vld [vmem:[%s1531_s3 + $0x10] sm:$0xff] }
  0x20   :  { %434 = vmatpush.bf16.msra.mxu2 %v1050_v30 }
  0x21   :  { %463 = vmatpush.bf16.msra.mxu3 %v1058_v31  ;;  %377 = vmatmul.bf16.vlgmr.msra.gmra.mxu0 %v829_v40 }
  0x22   :  { %406 = vmatmul.bf16.vlgmr.msra.gmra.mxu1 %v833_v41  ;;  %718 = vperm.xlu1 %1067, %v684_v11  }
  0x23   :  { %435 = vmatmul.bf16.vlgmr.msra.gmra.mxu2 %v837_v42  ;;  %713 = vperm.xlu2 %1068, %v683_v12  }
  0x24   :  { %464 = vmatmul.bf16.vlgmr.msra.gmra.mxu3 %v841_v43  ;;  %764 = vperm.xlu0 %1069, %v738_v13  }
  0x2a   :  { %744 = vperm.xlu1 %1067, %v734_v16  }
  0x2b   :  { %723 = vperm.xlu2 %1068, %v685_v17  }
  0x31   :  { %382 = vmatmul.bf16.gmra.mxu0 %v845_v52 }
  0x32   :  { %411 = vmatmul.bf16.gmra.mxu1 %v849_v53  ;;  %759 = vperm.xlu1 %1067, %v737_v28  }
  0x33   :  { %440 = vmatmul.bf16.gmra.mxu2 %v853_v54  ;;  %754 = vperm.xlu2 %1068, %v736_v29  }
  0x34   :  { %469 = vmatmul.bf16.gmra.mxu3 %v857_v55 }
  0x41   :  { %387 = vmatmul.bf16.gmra.mxu0 %v861_v7 }
  0x42   :  { %416 = vmatmul.bf16.gmra.mxu1 %v865_v8 }
  0x43   :  { %445 = vmatmul.bf16.gmra.mxu2 %v869_v9 }
  0x44   :  { %474 = vmatmul.bf16.gmra.mxu3 %v873_v10 }
  0x51   :  { %392 = vmatmul.bf16.gmra.mxu0 %v877_v24 }
  0x52   :  { %421 = vmatmul.bf16.gmra.mxu1 %v881_v25 }
  0x53   :  { %450 = vmatmul.bf16.gmra.mxu2 %v885_v26 }
  0x54   :  { %479 = vmatmul.bf16.gmra.mxu3 %v889_v27 }
  0x9e   :  { %v378_v30 = vpop.f32.mrf.mxu0 }
  0x9f   :  { %v407_v31 = vpop.f32.mrf.mxu1 }
  0xa0   :  { %v408_v32 = vadd.f32 %v407_v31, %v378_v30 }
  0xa6   :  { %v436_v33 = vpop.f32.mrf.mxu2  ;;  %v380_v36 = vpop.f32.mrf.mxu0 }
  0xa7   :  { %v465_v34 = vpop.f32.mrf.mxu3  ;;  %v437_v35 = vadd.f32 %v436_v33, %v408_v32  ;;  %v409_v37 = vpop.f32.mrf.mxu1 }
  0xa8   :  { %v410_v41 = vadd.f32 %v409_v37, %v380_v36 }
  0xa9   :  { %v1343_v38 = vadd.f32 %v465_v34, %v437_v35 }
  0xab   :  { %v486_v39 = vsel %vm485_vm0, %v1343_v38, 0.0  ;;  %v518_v40 = vmul.f32 %v1343_v38, %v1343_v38 }
  0xac   :  { %487 = vadd.xlane.f32.xlu0 %v486_v39 }
  0xad   :  { %v526_v42 = vsel %vm485_vm0, %v518_v40, 0.0 }
  0xae   :  { %v438_v43 = vpop.f32.mrf.mxu2  ;;  %527 = vadd.xlane.f32.xlu2 %v526_v42  ;;  %v383_v46 = vpop.f32.mrf.mxu0 }
  0xaf   :  { %v467_v44 = vpop.f32.mrf.mxu3  ;;  %v439_v45 = vadd.f32 %v438_v43, %v410_v41  ;;  %v412_v47 = vpop.f32.mrf.mxu1 }
  0xb0   :  { %v413_v49 = vadd.f32 %v412_v47, %v383_v46  ;;  %v1399_v47 = vpop.permute.xlu2 %693 }
  0xb1   :  { %v1350_v48 = vadd.f32 %v467_v44, %v439_v45 }
  0xb3   :  { %v489_v50 = vsel %vm485_vm0, %v1350_v48, 0.0  ;;  %v519_v56 = vmul.f32 %v1350_v48, %v1350_v48 }
  0xb4   :  { %490 = vadd.xlane.f32.xlu0 %v489_v50  ;;  %v741_v50 = vld [vmem:[%s1531_s3 + $0x38] sm:$0xff] }
  0xb5   :  { %v529_v59 = vsel %vm485_vm0, %v519_v56, 0.0 }
  0xb6   :  { %v441_v51 = vpop.f32.mrf.mxu2  ;;  %v385_v54 = vpop.f32.mrf.mxu0 }
  0xb7   :  { %v470_v52 = vpop.f32.mrf.mxu3  ;;  %v442_v53 = vadd.f32 %v441_v51, %v413_v49  ;;  %v414_v55 = vpop.f32.mrf.mxu1  ;;  %v739_v49 = vld [vmem:[%s1531_s3 + $0x28] sm:$0xff]  ;;  %v740_v51 = vld [vmem:[%s1531_s3 + $0x30] sm:$0xff] }
  0xb8   :  { %v415_v60 = vadd.f32 %v414_v55, %v385_v54  ;;  %v1412_v54 = vpop.permute.xlu0 %698 }
  0xb9   :  { %v1356_v57 = vadd.f32 %v470_v52, %v442_v53  ;;  %v1410_v52 = vpop.permute.xlu2 %703  ;;  %v689_v53 = vpop.permute.xlu1 %688 }
  0xbb   :  { %v492_v58 = vsel %vm485_vm0, %v1356_v57, 0.0  ;;  %v520_v2 = vmul.f32 %v1356_v57, %v1356_v57 }
  0xbc   :  { %493 = vadd.xlane.f32.xlu1 %v492_v58  ;;  %530 = vadd.xlane.f32.xlu0 %v529_v59 }
  0xbd   :  { %v532_v5 = vsel %vm485_vm0, %v520_v2, 0.0 }
  0xbe   :  { %v443_v61 = vpop.f32.mrf.mxu2  ;;  %v388_v0 = vpop.f32.mrf.mxu0 }
  0xbf   :  { %v472_v62 = vpop.f32.mrf.mxu3  ;;  %v444_v63 = vadd.f32 %v443_v61, %v415_v60  ;;  %v417_v1 = vpop.f32.mrf.mxu1 }
  0xc0   :  { %v418_v4 = vadd.f32 %v417_v1, %v388_v0  ;;  %v1418_v58 = vpop.permute.xlu0 %749 }
  0xc1   :  { %v1363_v3 = vadd.f32 %v472_v62, %v444_v63  ;;  %v1414_v55 = vpop.permute.xlu2 %713  ;;  %v1416_v56 = vpop.permute.xlu1 %708 }
  0xc3   :  { %v521_v6 = vmul.f32 %v1363_v3, %v1363_v3  ;;  %v495_v14 = vsel %vm485_vm0, %v1363_v3, 0.0 }
  0xc4   :  { %533 = vadd.xlane.f32.xlu1 %v532_v5 }
  0xc5   :  { %v535_v7 = vsel %vm485_vm0, %v521_v6, 0.0 }
  0xc6   :  { %v446_v8 = vpop.f32.mrf.mxu2  ;;  %536 = vadd.xlane.f32.xlu2 %v535_v7  ;;  %v390_v11 = vpop.f32.mrf.mxu0 }
  0xc7   :  { %v475_v9 = vpop.f32.mrf.mxu3  ;;  %v447_v10 = vadd.f32 %v446_v8, %v418_v4  ;;  %v419_v12 = vpop.f32.mrf.mxu1 }
  0xc8   :  { %v420_v16 = vadd.f32 %v419_v12, %v390_v11  ;;  %v1424_v61 = vpop.permute.xlu0 %764 }
  0xc9   :  { %v1369_v13 = vadd.f32 %v475_v9, %v447_v10  ;;  %v1420_v59 = vpop.permute.xlu2 %723  ;;  %v1422_v60 = vpop.permute.xlu1 %718 }
  0xcb   :  { %v522_v15 = vmul.f32 %v1369_v13, %v1369_v13  ;;  %v498_v17 = vsel %vm485_vm0, %v1369_v13, 0.0 }
  0xcc   :  { %496 = vadd.xlane.f32.xlu1 %v495_v14 }
  0xcd   :  { %v538_v18 = vsel %vm485_vm0, %v522_v15, 0.0 }
  0xce   :  { %v448_v19 = vpop.f32.mrf.mxu2  ;;  %499 = vadd.xlane.f32.xlu2 %v498_v17  ;;  %539 = vadd.xlane.f32.xlu0 %v538_v18  ;;  %v393_v22 = vpop.f32.mrf.mxu0 }
  0xcf   :  { %v477_v20 = vpop.f32.mrf.mxu3  ;;  %v449_v21 = vadd.f32 %v448_v19, %v420_v16  ;;  %v422_v23 = vpop.f32.mrf.mxu1 }
  0xd0   :  { %v423_v25 = vadd.f32 %v422_v23, %v393_v22 }
  0xd1   :  { %v1378_v24 = vadd.f32 %v477_v20, %v449_v21  ;;  %v1426_v62 = vpop.permute.xlu2 %754  ;;  %v745_v63 = vpop.permute.xlu1 %744 }
  0xd3   :  { %v523_v26 = vmul.f32 %v1378_v24, %v1378_v24  ;;  %v501_v28 = vsel %vm485_vm0, %v1378_v24, 0.0 }
  0xd5   :  { %v541_v27 = vsel %vm485_vm0, %v523_v26, 0.0 }
  0xd6   :  { %v451_v29 = vpop.f32.mrf.mxu2  ;;  %542 = vadd.xlane.f32.xlu1 %v541_v27  ;;  %502 = vadd.xlane.f32.xlu2 %v501_v28  ;;  %v395_v33 = vpop.f32.mrf.mxu0 }
  0xd7   :  { %v480_v30 = vpop.f32.mrf.mxu3  ;;  %v452_v31 = vadd.f32 %v451_v29, %v423_v25  ;;  %v424_v34 = vpop.f32.mrf.mxu1 }
  0xd8   :  { %v425_v37 = vadd.f32 %v424_v34, %v395_v33 }
  0xd9   :  { %v1385_v32 = vadd.f32 %v480_v30, %v452_v31  ;;  %v1428_v8 = vpop.permute.xlu1 %759 }
  0xdb   :  { %v504_v35 = vsel %vm485_vm0, %v1385_v32, 0.0  ;;  %v524_v36 = vmul.f32 %v1385_v32, %v1385_v32 }
  0xdc   :  { %505 = vadd.xlane.f32.xlu0 %v504_v35 }
  0xdd   :  { %v544_v39 = vsel %vm485_vm0, %v524_v36, 0.0 }
  0xde   :  { %v453_v40 = vpop.f32.mrf.mxu2  ;;  %545 = vadd.xlane.f32.xlu2 %v544_v39 }
  0xdf   :  { %v454_v41 = vadd.f32 %v453_v40, %v425_v37  ;;  %v482_v42 = vpop.f32.mrf.mxu3 }
  0xe1   :  { %v1392_v43 = vadd.f32 %v482_v42, %v454_v41 }
  0xe3   :  { %v507_v44 = vsel %vm485_vm0, %v1392_v43, 0.0  ;;  %v525_v45 = vmul.f32 %v1392_v43, %v1392_v43 }
  0xe4   :  { %508 = vadd.xlane.f32.xlu1 %v507_v44 }
  0xe5   :  { %v547_v46 = vsel %vm485_vm0, %v525_v45, 0.0 }
  0xe6   :  { %548 = vadd.xlane.f32.xlu0 %v547_v46 }
  0xf6   :  { %769 = vperm.xlu2 %1068, %v739_v49  }
  0xfa   :  { %779 = vperm.xlu0 %1069, %v741_v50  }
  0xfd   :  { %774 = vperm.xlu1 %1067, %v740_v51  }
 0x11f   :  { %v488_v0 = vpop.xlane.xlu0 %487 }
 0x120   :  { %v510_v1 = vmul.f32 0.03125, %v488_v0 }
 0x121   :  { %v528_v2 = vpop.xlane.xlu2 %527 }
 0x122   :  { %v558_v4 = vmul.f32 %v510_v1, %v510_v1  ;;  %v550_v5 = vmul.f32 0.03125, %v528_v2  ;;  %v574_v27 = vsub.f32 %v1343_v38, %v510_v1 }
 0x124   :  { %v566_v6 = vsub.f32 %v550_v5, %v558_v4 }
 0x126   :  { %v582_v7 = vadd.f32 1e-05, %v566_v6 }
 0x127   :  { %v491_v9 = vpop.xlane.xlu0 %490 }
 0x128   :  { %1070 = vrsqrt.f32 %v582_v7  ;;  %v511_v10 = vmul.f32 0.03125, %v491_v9  ;;  %vm596_vm2 = vweird.f32 %v582_v7 }
 0x12a   :  { %v559_v16 = vmul.f32 %v511_v10, %v511_v10  ;;  %v575_v9 = vsub.f32 %v1350_v48, %v511_v10 }
 0x12e   :  { %v1071_v11 = vpop.eup %1070 }
 0x12f   :  { %v591_v12 = vmul.f32 %v1071_v11, %v582_v7  ;;  %v494_v14 = vpop.xlane.xlu1 %493  ;;  %v531_v15 = vpop.xlane.xlu0 %530  ;;  %vm597_vm1 = vweird.f32 %v1071_v11 }
 0x130   :  { %v551_v17 = vmul.f32 0.03125, %v531_v15  ;;  %v1430_v21 = vmul.f32 0.03125, %v494_v14  ;;  %vm598_vm3 = vmor %vm596_vm2, %vm597_vm1 }
 0x131   :  { %v592_v18 = vmul.f32 %v1071_v11, %v591_v12 }
 0x132   :  { %v567_v19 = vsub.f32 %v551_v17, %v559_v16  ;;  %v560_v28 = vmul.f32 %v1430_v21, %v1430_v21 }
 0x133   :  { %v593_v20 = vmul.f32 0.5, %v592_v18 }
 0x134   :  { %v583_v22 = vadd.f32 1e-05, %v567_v19 }
 0x135   :  { %v594_v23 = vsub.f32 1.5, %v593_v20 }
 0x136   :  { %1072 = vrsqrt.f32 %v583_v22  ;;  %vm606_vm6 = vweird.f32 %v583_v22 }
 0x137   :  { %v595_v25 = vmul.f32 %v1071_v11, %v594_v23  ;;  %v534_v26 = vpop.xlane.xlu1 %533 }
 0x138   :  { %v552_v29 = vmul.f32 0.03125, %v534_v26 }
 0x139   :  { %v599_v30 = vsel %vm598_vm3, %v1071_v11, %v595_v25  ;;  %v537_v31 = vpop.xlane.xlu2 %536 }
 0x13a   :  { %v670_v33 = vmul.f32 %v599_v30, %v574_v27  ;;  %v568_v34 = vsub.f32 %v552_v29, %v560_v28  ;;  %v553_v51 = vmul.f32 0.03125, %v537_v31  ;;  %v576_v29 = vsub.f32 %v1356_v57, %v1430_v21 }
 0x13c   :  { %v1073_v35 = vpop.eup %1072  ;;  %v726_v36 = vmul.f32 %v689_v53, %v670_v33  ;;  %v584_v37 = vadd.f32 1e-05, %v568_v34 }
 0x13d   :  { %v601_v39 = vmul.f32 %v1073_v35, %v583_v22  ;;  %vm607_vm5 = vweird.f32 %v1073_v35 }
 0x13e   :  { %v782_v40 = vadd.f32 %v745_v63, %v726_v36  ;;  %1074 = vrsqrt.f32 %v584_v37  ;;  %vm608_vm7 = vmor %vm606_vm6, %vm607_vm5  ;;  %vm616_vm9 = vweird.f32 %v584_v37 }
 0x13f   :  { %v602_v41 = vmul.f32 %v1073_v35, %v601_v39  ;;  %v497_v42 = vpop.xlane.xlu1 %496 }
 0x140   :  { %vm790_vm4 = vcmp.ge.f32.partialorder %v782_v40, 0.0  ;;  %v798_v44 = vmul.f32 0.2, %v782_v40  ;;  %v1435_v38 = vmul.f32 0.03125, %v497_v42 }
 0x141   :  { %v603_v45 = vmul.f32 0.5, %v602_v41  ;;  %v500_v46 = vpop.xlane.xlu2 %499  ;;  %v540_v49 = vpop.xlane.xlu0 %539 }
 0x142   :  { %v806_v50 = vsel %vm790_vm4, %v782_v40, %v798_v44  ;;  %v561_v0 = vmul.f32 %v1435_v38, %v1435_v38  ;;  %v1439_v1 = vmul.f32 0.03125, %v500_v46  ;;  %v554_v5 = vmul.f32 0.03125, %v540_v49 }
 0x143   :  { %814 = vst.msk [vmem:[%s1532_s4] sm:$0xff] %vm485_vm0, %v806_v50  ;;  %v604_v53 = vsub.f32 1.5, %v603_v45 }
 0x144   :  { %v1075_v63 = vpop.eup %1074  ;;  %v569_v2 = vsub.f32 %v553_v51, %v561_v0  ;;  %v562_v4 = vmul.f32 %v1439_v1, %v1439_v1 }
 0x145   :  { %v605_v6 = vmul.f32 %v1073_v35, %v604_v53  ;;  %v611_v7 = vmul.f32 %v1075_v63, %v584_v37  ;;  %vm617_vm8 = vweird.f32 %v1075_v63 }
 0x146   :  { %v585_v11 = vadd.f32 1e-05, %v569_v2  ;;  %v570_v12 = vsub.f32 %v554_v5, %v562_v4  ;;  %vm618_vm11 = vmor %vm616_vm9, %vm617_vm8 }
 0x147   :  { %v609_v14 = vsel %vm608_vm7, %v1073_v35, %v605_v6  ;;  %v612_v15 = vmul.f32 %v1075_v63, %v611_v7  ;;  %v577_v6 = vsub.f32 %v1363_v3, %v1435_v38  ;;  %v578_v3 = vsub.f32 %v1369_v13, %v1439_v1 }
 0x148   :  { %v671_v16 = vmul.f32 %v609_v14, %v575_v9  ;;  %1076 = vrsqrt.f32 %v585_v11  ;;  %v1448_v17 = vadd.f32 1e-05, %v570_v12  ;;  %vm626_vm14 = vweird.f32 %v585_v11 }
 0x149   :  { %v613_v18 = vmul.f32 0.5, %v612_v15  ;;  %v503_v19 = vpop.xlane.xlu2 %502  ;;  %v543_v23 = vpop.xlane.xlu1 %542 }
 0x14a   :  { %v727_v20 = vmul.f32 %v1399_v47, %v671_v16  ;;  %1078 = vrsqrt.f32 %v1448_v17  ;;  %v1452_v25 = vmul.f32 0.03125, %v503_v19  ;;  %v555_v26 = vmul.f32 0.03125, %v543_v23 }
 0x14b   :  { %v614_v22 = vsub.f32 1.5, %v613_v18  ;;  %vm636_vm2 = vweird.f32 %v1448_v17 }
 0x14c   :  { %v783_v48 = vadd.f32 %v1418_v58, %v727_v20  ;;  %v563_v27 = vmul.f32 %v1452_v25, %v1452_v25 }
 0x14d   :  { %v615_v10 = vmul.f32 %v1075_v63, %v614_v22 }
 0x14e   :  { %v1077_v28 = vpop.eup %1076  ;;  %vm791_vm10 = vcmp.ge.f32.partialorder %v783_v48, 0.0  ;;  %v799_v47 = vmul.f32 0.2, %v783_v48  ;;  %v571_v33 = vsub.f32 %v555_v26, %v563_v27 }
 0x14f   :  { %v619_v30 = vsel %vm618_vm11, %v1075_v63, %v615_v10  ;;  %v621_v31 = vmul.f32 %v1077_v28, %v585_v11  ;;  %v506_v34 = vpop.xlane.xlu0 %505  ;;  %vm627_vm12 = vweird.f32 %v1077_v28 }
 0x150   :  { %v1079_v35 = vpop.eup %1078  ;;  %v807_v36 = vsel %vm791_vm10, %v783_v48, %v799_v47  ;;  %v672_v58 = vmul.f32 %v619_v30, %v576_v29  ;;  %v1459_v39 = vmul.f32 0.03125, %v506_v34  ;;  %v1466_v21 = vadd.f32 1e-05, %v571_v33  ;;  %vm628_vm1 = vmor %vm626_vm14, %vm627_vm12 }
 0x151   :  { %815 = vst.msk [vmem:[%s1532_s4 + $0x8] sm:$0xff] %vm485_vm0, %v807_v36  ;;  %v622_v37 = vmul.f32 %v1077_v28, %v621_v31  ;;  %v631_v57 = vmul.f32 %v1079_v35, %v1448_v17  ;;  %v546_v40 = vpop.xlane.xlu2 %545  ;;  %vm637_vm15 = vweird.f32 %v1079_v35 }
 0x152   :  { %v728_v41 = vmul.f32 %v1412_v54, %v672_v58  ;;  %v564_v42 = vmul.f32 %v1459_v39, %v1459_v39  ;;  %v556_v44 = vmul.f32 0.03125, %v546_v40  ;;  %1080 = vrsqrt.f32 %v1466_v21  ;;  %vm638_vm3 = vmor %vm636_vm2, %vm637_vm15 }
 0x153   :  { %v623_v45 = vmul.f32 0.5, %v622_v37  ;;  %v632_v46 = vmul.f32 %v1079_v35, %v631_v57  ;;  %vm646_vm6 = vweird.f32 %v1466_v21 }
 0x154   :  { %v784_v49 = vadd.f32 %v1426_v62, %v728_v41  ;;  %v572_v50 = vsub.f32 %v556_v44, %v564_v42 }
 0x155   :  { %v624_v51 = vsub.f32 1.5, %v623_v45  ;;  %v633_v0 = vmul.f32 0.5, %v632_v46 }
 0x156   :  { %vm792_vm13 = vcmp.ge.f32.partialorder %v784_v49, 0.0  ;;  %v800_v53 = vmul.f32 0.2, %v784_v49  ;;  %v1473_v63 = vadd.f32 1e-05, %v572_v50 }
 0x157   :  { %v625_v2 = vmul.f32 %v1077_v28, %v624_v51  ;;  %v634_v54 = vsub.f32 1.5, %v633_v0  ;;  %v509_v4 = vpop.xlane.xlu1 %508 }
 0x158   :  { %v808_v5 = vsel %vm792_vm13, %v784_v49, %v800_v53  ;;  %1082 = vrsqrt.f32 %v1473_v63  ;;  %v1478_v62 = vmul.f32 0.03125, %v509_v4  ;;  %v1081_v7 = vpop.eup %1080  ;;  %vm656_vm10 = vweird.f32 %v1473_v63 }
 0x159   :  { %816 = vst.msk [vmem:[%s1532_s4 + $0x10] sm:$0xff] %vm485_vm0, %v808_v5  ;;  %v629_v9 = vsel %vm628_vm1, %v1077_v28, %v625_v2  ;;  %v635_v11 = vmul.f32 %v1079_v35, %v634_v54  ;;  %v549_v12 = vpop.xlane.xlu0 %548  ;;  %v641_v38 = vmul.f32 %v1081_v7, %v1466_v21  ;;  %vm647_vm4 = vweird.f32 %v1081_v7 }
 0x15a   :  { %v673_v14 = vmul.f32 %v629_v9, %v577_v6  ;;  %v565_v15 = vmul.f32 %v1478_v62, %v1478_v62  ;;  %v557_v18 = vmul.f32 0.03125, %v549_v12  ;;  %vm648_vm8 = vmor %vm646_vm6, %vm647_vm4  ;;  %v581_v51 = vsub.f32 %v1392_v43, %v1478_v62 }
 0x15b   :  { %v639_v16 = vsel %vm638_vm3, %v1079_v35, %v635_v11  ;;  %v642_v23 = vmul.f32 %v1081_v7, %v641_v38 }
 0x15c   :  { %v729_v19 = vmul.f32 %v1410_v52, %v673_v14  ;;  %v674_v20 = vmul.f32 %v639_v16, %v578_v3  ;;  %v573_v22 = vsub.f32 %v557_v18, %v565_v15 }
 0x15d   :  { %v643_v13 = vmul.f32 0.5, %v642_v23 }
 0x15e   :  { %v1083_v17 = vpop.eup %1082  ;;  %v785_v48 = vadd.f32 %v1428_v8, %v729_v19  ;;  %v730_v10 = vmul.f32 %v1416_v56, %v674_v20  ;;  %v589_v26 = vadd.f32 1e-05, %v573_v22  ;;  %v579_v56 = vsub.f32 %v1378_v24, %v1452_v25  ;;  %v770_v25 = vpop.permute.xlu2 %769 }
 0x15f   :  { %v651_v1 = vmul.f32 %v1083_v17, %v1473_v63  ;;  %v644_v29 = vsub.f32 1.5, %v643_v13  ;;  %vm657_vm9 = vweird.f32 %v1083_v17  ;;  %v580_v24 = vsub.f32 %v1385_v32, %v1459_v39 }
 0x160   :  { %vm793_vm5 = vcmp.ge.f32.partialorder %v785_v48, 0.0  ;;  %v801_v27 = vmul.f32 0.2, %v785_v48  ;;  %v786_v28 = vadd.f32 %v1424_v61, %v730_v10  ;;  %1084 = vrsqrt.f32 %v589_v26  ;;  %vm658_vm11 = vmor %vm656_vm10, %vm657_vm9 }
 0x161   :  { %v652_v47 = vmul.f32 %v1083_v17, %v651_v1  ;;  %v645_v8 = vmul.f32 %v1081_v7, %v644_v29  ;;  %vm666_vm14 = vweird.f32 %v589_v26 }
 0x162   :  { %v809_v52 = vsel %vm793_vm5, %v785_v48, %v801_v27  ;;  %vm794_vm7 = vcmp.ge.f32.partialorder %v786_v28, 0.0  ;;  %v802_v30 = vmul.f32 0.2, %v786_v28 }
 0x163   :  { %817 = vst.msk [vmem:[%s1532_s4 + $0x18] sm:$0xff] %vm485_vm0, %v809_v52  ;;  %v653_v31 = vmul.f32 0.5, %v652_v47  ;;  %v649_v33 = vsel %vm648_vm8, %v1081_v7, %v645_v8 }
 0x164   :  { %v810_v61 = vsel %vm794_vm7, %v786_v28, %v802_v30  ;;  %v675_v35 = vmul.f32 %v649_v33, %v579_v56 }
 0x165   :  { %818 = vst.msk [vmem:[%s1532_s4 + $0x20] sm:$0xff] %vm485_vm0, %v810_v61  ;;  %v654_v34 = vsub.f32 1.5, %v653_v31 }
 0x166   :  { %v1085_v36 = vpop.eup %1084  ;;  %v731_v58 = vmul.f32 %v1414_v55, %v675_v35 }
 0x167   :  { %v655_v37 = vmul.f32 %v1083_v17, %v654_v34  ;;  %v661_v57 = vmul.f32 %v1085_v36, %v589_v26  ;;  %vm667_vm13 = vweird.f32 %v1085_v36 }
 0x168   :  { %v787_v21 = vadd.f32 %v770_v25, %v731_v58  ;;  %vm668_vm15 = vmor %vm666_vm14, %vm667_vm13 }
 0x169   :  { %v659_v40 = vsel %vm658_vm11, %v1083_v17, %v655_v37  ;;  %v662_v41 = vmul.f32 %v1085_v36, %v661_v57 }
 0x16a   :  { %v676_v42 = vmul.f32 %v659_v40, %v580_v24  ;;  %vm795_vm12 = vcmp.ge.f32.partialorder %v787_v21, 0.0  ;;  %v803_v44 = vmul.f32 0.2, %v787_v21 }
 0x16b   :  { %v663_v45 = vmul.f32 0.5, %v662_v41 }
 0x16c   :  { %v811_v46 = vsel %vm795_vm12, %v787_v21, %v803_v44  ;;  %v732_v32 = vmul.f32 %v1422_v60, %v676_v42  ;;  %v780_v60 = vpop.permute.xlu0 %779 }
 0x16d   :  { %819 = vst.msk [vmem:[%s1532_s4 + $0x28] sm:$0xff] %vm485_vm0, %v811_v46  ;;  %v664_v55 = vsub.f32 1.5, %v663_v45 }
 0x16f   :  { %v775_v39 = vpop.permute.xlu1 %774  ;;  %v665_v49 = vmul.f32 %v1085_v36, %v664_v55 }
 0x170   :  { %v788_v50 = vadd.f32 %v775_v39, %v732_v32 }
 0x171   :  { %v669_v0 = vsel %vm668_vm15, %v1085_v36, %v665_v49 }
 0x172   :  { %vm796_vm1 = vcmp.ge.f32.partialorder %v788_v50, 0.0  ;;  %v804_v53 = vmul.f32 0.2, %v788_v50  ;;  %v677_v63 = vmul.f32 %v669_v0, %v581_v51 }
 0x174   :  { %v812_v2 = vsel %vm796_vm1, %v788_v50, %v804_v53  ;;  %v733_v54 = vmul.f32 %v1420_v59, %v677_v63 }
 0x175   :  { %820 = vst.msk [vmem:[%s1532_s4 + $0x30] sm:$0xff] %vm485_vm0, %v812_v2 }
 0x176   :  { %v789_v4 = vadd.f32 %v780_v60, %v733_v54 }
 0x178   :  { %vm797_vm2 = vcmp.ge.f32.partialorder %v789_v4, 0.0  ;;  %v805_v5 = vmul.f32 0.2, %v789_v4 }
 0x17a   :  { %v813_v6 = vsel %vm797_vm2, %v789_v4, %v805_v5 }
 0x17b   :  { %821 = vst.msk [vmem:[%s1532_s4 + $0x38] sm:$0xff] %vm485_vm0, %v813_v6 }

// kernel: _lambda_.9
= control target key start
LH: loop header
LB: loop body
LE: loop exit
PB: predicated region body
PF: predicated region fallthrough
CT: control target
= control target key end

     0   :  { %s1249_s0 = inlined_call_operand.vmem [shape: bf16[1,1024], index: 0, kind: input, shape index: {}]   ;;  %s1250_s1 = inlined_call_operand.vmem [shape: bf16[1024,2], index: 1, kind: input, shape index: {}]   ;;  %s1251_s2 = inlined_call_operand.hbm [shape: f32[1,2], index: 2, kind: output, shape index: {}]  }
   0x1   :  { %v947_v0 = vld [vmem:[%s1250_s1 + $0x38] sm:$0xff]  ;;  %v946_v4 = vld [vmem:[%s1250_s1 + $0x30] sm:$0xff]  ;;  %v945_v8 = vld [vmem:[%s1250_s1 + $0x28] sm:$0xff] }
   0x2   :  { %v955_v1 = vld [vmem:[%s1250_s1 + $0x78] sm:$0xff]  ;;  %543 = vmatpush.bf16.msra.mxu0 %v947_v0  ;;  %v954_v5 = vld [vmem:[%s1250_s1 + $0x70] sm:$0xff]  ;;  %v953_v9 = vld [vmem:[%s1250_s1 + $0x68] sm:$0xff] }
   0x3   :  { %v963_v2 = vld [vmem:[%s1250_s1 + $0xb8] sm:$0xff]  ;;  %556 = vmatpush.bf16.msra.mxu1 %v955_v1  ;;  %v962_v6 = vld [vmem:[%s1250_s1 + $0xb0] sm:$0xff]  ;;  %v961_v10 = vld [vmem:[%s1250_s1 + $0xa8] sm:$0xff] }
   0x4   :  { %v971_v3 = vld [vmem:[%s1250_s1 + $0xf8] sm:$0xff]  ;;  %569 = vmatpush.bf16.msra.mxu2 %v963_v2  ;;  %v970_v7 = vld [vmem:[%s1250_s1 + $0xf0] sm:$0xff]  ;;  %v969_v11 = vld [vmem:[%s1250_s1 + $0xe8] sm:$0xff] }
   0x5   :  { %582 = vmatpush.bf16.msra.mxu3 %v971_v3  ;;  %v944_v12 = vld [vmem:[%s1250_s1 + $0x20] sm:$0xff]  ;;  %v943_v17 = vld [vmem:[%s1250_s1 + $0x18] sm:$0xff]  ;;  %v942_v21 = vld [vmem:[%s1250_s1 + $0x10] sm:$0xff] }
   0x6   :  { %544 = vmatpush.bf16.msra.mxu0 %v946_v4  ;;  %v952_v13 = vld [vmem:[%s1250_s1 + $0x60] sm:$0xff]  ;;  %v951_v18 = vld [vmem:[%s1250_s1 + $0x58] sm:$0xff]  ;;  %v950_v22 = vld [vmem:[%s1250_s1 + $0x50] sm:$0xff] }
   0x7   :  { %557 = vmatpush.bf16.msra.mxu1 %v954_v5  ;;  %v960_v14 = vld [vmem:[%s1250_s1 + $0xa0] sm:$0xff]  ;;  %v959_v19 = vld [vmem:[%s1250_s1 + $0x98] sm:$0xff] }
   0x8   :  { %570 = vmatpush.bf16.msra.mxu2 %v962_v6  ;;  %v968_v15 = vld [vmem:[%s1250_s1 + $0xe0] sm:$0xff]  ;;  %v967_v20 = vld [vmem:[%s1250_s1 + $0xd8] sm:$0xff] }
   0x9   :  { %583 = vmatpush.bf16.msra.mxu3 %v970_v7  ;;  %v12_v16 = vld [vmem:[%s1249_s0] sm:$0xff] }
   0xa   :  { %545 = vmatpush.bf16.msra.mxu0 %v945_v8  ;;  %142 = vst [vmem:[#allocation1] ss:$9 sm:$0xff] %v12_v16 }
   0xb   :  { %558 = vmatpush.bf16.msra.mxu1 %v953_v9 }
   0xc   :  { %571 = vmatpush.bf16.msra.mxu2 %v961_v10 }
   0xd   :  { %584 = vmatpush.bf16.msra.mxu3 %v969_v11 }
   0xe   :  { %546 = vmatpush.bf16.msra.mxu0 %v944_v12 }
   0xf   :  { %559 = vmatpush.bf16.msra.mxu1 %v952_v13 }
  0x10   :  { %572 = vmatpush.bf16.msra.mxu2 %v960_v14 }
  0x11   :  { %585 = vmatpush.bf16.msra.mxu3 %v968_v15 }
  0x12   :  { %547 = vmatpush.bf16.msra.mxu0 %v943_v17 }
  0x13   :  { %560 = vmatpush.bf16.msra.mxu1 %v951_v18 }
  0x14   :  { %7 = vsyncpa [#allocation3], 0  ;;  %573 = vmatpush.bf16.msra.mxu2 %v959_v19  ;;  %v958_v23 = vld [vmem:[%s1250_s1 + $0x90] sm:$0xff]  ;;  %v941_v25 = vld [vmem:[%s1250_s1 + $0x8] sm:$0xff]  ;;  %s675_s26 = sshll.u32 %s1251_s2, 4  ;;  %vm666_vm3 = vcmask 8192   ;;  %s676_s26 = int_to_ptr.hbm [resolvable:$true] %s675_s26 }
  0x15   :  { %586 = vmatpush.bf16.msra.mxu3 %v967_v20  ;;  %v966_v24 = vld [vmem:[%s1250_s1 + $0xd0] sm:$0xff]  ;;  %v949_v26 = vld [vmem:[%s1250_s1 + $0x48] sm:$0xff]  ;;  %v940_v29 = vld [vmem:[%s1250_s1] sm:$0xff] }
  0x16   :  { %548 = vmatpush.bf16.msra.mxu0 %v942_v21  ;;  %v957_v27 = vld [vmem:[%s1250_s1 + $0x88] sm:$0xff]  ;;  %v948_v30 = vld [vmem:[%s1250_s1 + $0x40] sm:$0xff]  ;;  %v979_v33 = vld [vmem:[%s1250_s1 + $0x138] sm:$0xff] }
  0x17   :  { %561 = vmatpush.bf16.msra.mxu1 %v950_v22  ;;  %v965_v28 = vld [vmem:[%s1250_s1 + $0xc8] sm:$0xff]  ;;  %v956_v31 = vld [vmem:[%s1250_s1 + $0x80] sm:$0xff]  ;;  %v987_v34 = vld [vmem:[%s1250_s1 + $0x178] sm:$0xff] }
  0x18   :  { %574 = vmatpush.bf16.msra.mxu2 %v958_v23  ;;  %v964_v32 = vld [vmem:[%s1250_s1 + $0xc0] sm:$0xff]  ;;  %v995_v35 = vld [vmem:[%s1250_s1 + $0x1b8] sm:$0xff]  ;;  %v978_v37 = vld [vmem:[%s1250_s1 + $0x130] sm:$0xff] }
  0x19   :  { %587 = vmatpush.bf16.msra.mxu3 %v966_v24  ;;  %v1003_v36 = vld [vmem:[%s1250_s1 + $0x1f8] sm:$0xff]  ;;  %v143_v39 = vld [vmem:[#allocation1] sm:$0xff]  ;;  %v986_v40 = vld [vmem:[%s1250_s1 + $0x170] sm:$0xff] }
  0x1a   :  { %549 = vmatpush.bf16.msra.mxu0 %v941_v25  ;;  %v145_v38 = vld [vmem:[#allocation1 + $0x12] sm:$0xff]  ;;  %v146_v41 = vld [vmem:[#allocation1 + $0x1b] sm:$0xff]  ;;  %v144_v42 = vld [vmem:[#allocation1 + $0x9] sm:$0xff] }
  0x1b   :  { %562 = vmatpush.bf16.msra.mxu1 %v949_v26  ;;  %v994_v43 = vld [vmem:[%s1250_s1 + $0x1b0] sm:$0xff]  ;;  %v977_v45 = vld [vmem:[%s1250_s1 + $0x128] sm:$0xff]  ;;  %v976_v49 = vld [vmem:[%s1250_s1 + $0x120] sm:$0xff] }
  0x1c   :  { %575 = vmatpush.bf16.msra.mxu2 %v957_v27  ;;  %v1002_v44 = vld [vmem:[%s1250_s1 + $0x1f0] sm:$0xff]  ;;  %v985_v46 = vld [vmem:[%s1250_s1 + $0x168] sm:$0xff]  ;;  %v984_v50 = vld [vmem:[%s1250_s1 + $0x160] sm:$0xff] }
  0x1d   :  { %588 = vmatpush.bf16.msra.mxu3 %v965_v28  ;;  %v993_v47 = vld [vmem:[%s1250_s1 + $0x1a8] sm:$0xff]  ;;  %v992_v51 = vld [vmem:[%s1250_s1 + $0x1a0] sm:$0xff]  ;;  %v975_v53 = vld [vmem:[%s1250_s1 + $0x118] sm:$0xff] }
  0x1e   :  { %550 = vmatpush.bf16.msra.mxu0 %v940_v29  ;;  %v1001_v48 = vld [vmem:[%s1250_s1 + $0x1e8] sm:$0xff]  ;;  %v1000_v52 = vld [vmem:[%s1250_s1 + $0x1e0] sm:$0xff]  ;;  %v983_v54 = vld [vmem:[%s1250_s1 + $0x158] sm:$0xff] }
  0x1f   :  { %563 = vmatpush.bf16.msra.mxu1 %v948_v30  ;;  %v991_v55 = vld [vmem:[%s1250_s1 + $0x198] sm:$0xff]  ;;  %v974_v57 = vld [vmem:[%s1250_s1 + $0x110] sm:$0xff]  ;;  %v973_v61 = vld [vmem:[%s1250_s1 + $0x108] sm:$0xff] }
  0x20   :  { %576 = vmatpush.bf16.msra.mxu2 %v956_v31  ;;  %v999_v56 = vld [vmem:[%s1250_s1 + $0x1d8] sm:$0xff]  ;;  %v982_v58 = vld [vmem:[%s1250_s1 + $0x150] sm:$0xff]  ;;  %v981_v62 = vld [vmem:[%s1250_s1 + $0x148] sm:$0xff] }
  0x21   :  { %589 = vmatpush.bf16.msra.mxu3 %v964_v32  ;;  %551 = vmatmul.bf16.vlgmr.msra.gmra.mxu0 %v143_v39  ;;  %v990_v59 = vld [vmem:[%s1250_s1 + $0x190] sm:$0xff]  ;;  %v989_v63 = vld [vmem:[%s1250_s1 + $0x188] sm:$0xff]  ;;  %v972_v1 = vld [vmem:[%s1250_s1 + $0x100] sm:$0xff] }
  0x22   :  { %595 = vmatpush.bf16.msrb.mxu0 %v979_v33  ;;  %564 = vmatmul.bf16.vlgmr.msra.gmra.mxu1 %v144_v42  ;;  %v998_v60 = vld [vmem:[%s1250_s1 + $0x1d0] sm:$0xff]  ;;  %v997_v0 = vld [vmem:[%s1250_s1 + $0x1c8] sm:$0xff]  ;;  %v980_v2 = vld [vmem:[%s1250_s1 + $0x140] sm:$0xff] }
  0x23   :  { %608 = vmatpush.bf16.msrb.mxu1 %v987_v34  ;;  %577 = vmatmul.bf16.vlgmr.msra.gmra.mxu2 %v145_v38  ;;  %v988_v3 = vld [vmem:[%s1250_s1 + $0x180] sm:$0xff]  ;;  %v148_v6 = vld [vmem:[#allocation1 + $0x2d] sm:$0xff]  ;;  %v149_v7 = vld [vmem:[#allocation1 + $0x36] sm:$0xff] }
  0x24   :  { %621 = vmatpush.bf16.msrb.mxu2 %v995_v35  ;;  %590 = vmatmul.bf16.vlgmr.msra.gmra.mxu3 %v146_v41  ;;  %v996_v4 = vld [vmem:[%s1250_s1 + $0x1c0] sm:$0xff]  ;;  %s1035_s1 = smov [#allocation2]  }
  0x25   :  { %634 = vmatpush.bf16.msrb.mxu3 %v1003_v36  ;;  %v147_v5 = vld [vmem:[#allocation1 + $0x24] sm:$0xff]  ;;  %s673_s23 = sshll.u32 %s1035_s1, 4  ;;  %s674_s23 = int_to_ptr.vmem [resolvable:$true] %s673_s23 }
  0x26   :  { %596 = vmatpush.bf16.msrb.mxu0 %v978_v37  ;;  %v150_v8 = vld [vmem:[#allocation1 + $0x3f] sm:$0xff] }
  0x27   :  { %609 = vmatpush.bf16.msrb.mxu1 %v986_v40 }
  0x28   :  { %622 = vmatpush.bf16.msrb.mxu2 %v994_v43 }
  0x29   :  { %635 = vmatpush.bf16.msrb.mxu3 %v1002_v44 }
  0x2a   :  { %597 = vmatpush.bf16.msrb.mxu0 %v977_v45 }
  0x2b   :  { %610 = vmatpush.bf16.msrb.mxu1 %v985_v46 }
  0x2c   :  { %623 = vmatpush.bf16.msrb.mxu2 %v993_v47 }
  0x2d   :  { %636 = vmatpush.bf16.msrb.mxu3 %v1001_v48 }
  0x2e   :  { %598 = vmatpush.bf16.msrb.mxu0 %v976_v49 }
  0x2f   :  { %611 = vmatpush.bf16.msrb.mxu1 %v984_v50 }
  0x30   :  { %624 = vmatpush.bf16.msrb.mxu2 %v992_v51 }
  0x31   :  { %637 = vmatpush.bf16.msrb.mxu3 %v1000_v52 }
  0x32   :  { %599 = vmatpush.bf16.msrb.mxu0 %v975_v53 }
  0x33   :  { %612 = vmatpush.bf16.msrb.mxu1 %v983_v54 }
  0x34   :  { %625 = vmatpush.bf16.msrb.mxu2 %v991_v55 }
  0x35   :  { %638 = vmatpush.bf16.msrb.mxu3 %v999_v56 }
  0x36   :  { %600 = vmatpush.bf16.msrb.mxu0 %v974_v57 }
  0x37   :  { %613 = vmatpush.bf16.msrb.mxu1 %v982_v58 }
  0x38   :  { %626 = vmatpush.bf16.msrb.mxu2 %v990_v59 }
  0x39   :  { %639 = vmatpush.bf16.msrb.mxu3 %v998_v60 }
  0x3a   :  { %601 = vmatpush.bf16.msrb.mxu0 %v973_v61 }
  0x3b   :  { %614 = vmatpush.bf16.msrb.mxu1 %v981_v62 }
  0x3c   :  { %627 = vmatpush.bf16.msrb.mxu2 %v989_v63 }
  0x3d   :  { %640 = vmatpush.bf16.msrb.mxu3 %v997_v0 }
  0x3e   :  { %602 = vmatpush.bf16.msrb.mxu0 %v972_v1 }
  0x3f   :  { %615 = vmatpush.bf16.msrb.mxu1 %v980_v2 }
  0x40   :  { %628 = vmatpush.bf16.msrb.mxu2 %v988_v3 }
  0x41   :  { %641 = vmatpush.bf16.msrb.mxu3 %v996_v4  ;;  %603 = vmatmul.bf16.vlgmr.msrb.gmra.mxu0 %v147_v5 }
  0x42   :  { %616 = vmatmul.bf16.vlgmr.msrb.gmra.mxu1 %v148_v6 }
  0x43   :  { %629 = vmatmul.bf16.vlgmr.msrb.gmra.mxu2 %v149_v7 }
  0x44   :  { %642 = vmatmul.bf16.vlgmr.msrb.gmra.mxu3 %v150_v8 }
  0x9e   :  { %v552_v9 = vpop.f32.mrf.mxu0 }
  0x9f   :  { %v565_v10 = vpop.f32.mrf.mxu1 }
  0xa0   :  { %v566_v17 = vadd.f32 %v565_v10, %v552_v9 }
  0xa6   :  { %v578_v11 = vpop.f32.mrf.mxu2  ;;  %v554_v13 = vpop.f32.mrf.mxu0 }
  0xa7   :  { %v591_v12 = vpop.f32.mrf.mxu3  ;;  %v567_v14 = vpop.f32.mrf.mxu1  ;;  %v579_v18 = vadd.f32 %v578_v11, %v566_v17 }
  0xa9   :  { %v592_v19 = vadd.f32 %v591_v12, %v579_v18 }
  0xae   :  { %v580_v15 = vpop.f32.mrf.mxu2 }
  0xaf   :  { %v593_v16 = vpop.f32.mrf.mxu3 }
  0xbe   :  { %v604_v20 = vpop.f32.mrf.mxu0 }
  0xbf   :  { %v617_v21 = vpop.f32.mrf.mxu1  ;;  %v605_v22 = vadd.f32 %v604_v20, %v592_v19 }
  0xc1   :  { %v618_v23 = vadd.f32 %v617_v21, %v605_v22 }
  0xc6   :  { %v630_v24 = vpop.f32.mrf.mxu2  ;;  %v606_v27 = vpop.f32.mrf.mxu0 }
  0xc7   :  { %v643_v25 = vpop.f32.mrf.mxu3  ;;  %v631_v26 = vadd.f32 %v630_v24, %v618_v23  ;;  %v619_v28 = vpop.f32.mrf.mxu1 }
  0xc9   :  { %v644_v29 = vadd.f32 %v643_v25, %v631_v26 }
  0xcb   :  { %v647_v30 = vsub.f32 0.0, %v644_v29 }
  0xcd   :  { %v648_v31 = vmul.f32 1.442695, %v647_v30 }
  0xce   :  { %v632_v32 = vpop.f32.mrf.mxu2 }
  0xcf   :  { %v645_v33 = vpop.f32.mrf.mxu3  ;;  %1005 = vpow2.f32 %v648_v31 }
  0xd5   :  { %v1006_v34 = vpop.eup %1005 }
  0xd6   :  { %v650_v35 = vadd.f32 1.0, %v1006_v34 }
  0xd8   :  { %1007 = vrcp.f32 %v650_v35  ;;  %v662_v39 = vand.u32 2147483648, %v650_v35  ;;  %v660_v41 = vand.u32 2147483647, %v650_v35  ;;  %vm656_vm1 = vweird.f32 %v650_v35 }
  0xda   :  { %v663_v43 = vor.u32 1.1754944e-38, %v662_v39  ;;  %vm661_vm4 = vcmp.eq.f32.partialorder %v660_v41, 8.507059e+37 }
  0xde   :  { %v1008_v36 = vpop.eup %1007 }
  0xdf   :  { %v652_v37 = vmul.f32 %v1008_v36, %v650_v35  ;;  %vm657_vm0 = vweird.f32 %v1008_v36 }
  0xe0   :  { %vm658_vm2 = vmor %vm656_vm1, %vm657_vm0 }
  0xe1   :  { %v653_v38 = vsub.f32 1.0, %v652_v37 }
  0xe3   :  { %v654_v40 = vmul.f32 %v1008_v36, %v653_v38 }
  0xe5   :  { %v655_v42 = vadd.f32 %v1008_v36, %v654_v40 }
  0xe7   :  { %v659_v44 = vsel %vm658_vm2, %v1008_v36, %v655_v42 }
  0xe8   :  { %v664_v45 = vsel %vm661_vm4, %v663_v43, %v659_v44 }
  0xe9   :  { %667 = vst.msk [vmem:[#allocation2] sm:$0x1] %vm666_vm3, %v664_v45 }
  0xea   :  { %678 = dma.vmem_to_hbm [thread:$0]  %s674_s23, 16, %s676_s26, [#allocation3]  }
  0xeb   :  { %1033 = dma.done.wait [#allocation3], 16  }
  0xec   :  { %1034 = vsyncadd [#allocation3], 4294967280 }
  0xed   :  { %683 = vsyncpa [#allocation3], 1 }

</bundles_post_ra>
